<compile_context>
chip_gen: v5e
topology: v5e:2x2
jax: 0.10.0
libtpu: 0.0.40
codegen_flags: <defaults>
</compile_context>

<pallas_src>
import functools

import jax
import jax.numpy as jnp
from jax.experimental import pallas as pl
from jax.experimental.pallas import tpu as pltpu


# ------------------------------ fused kernel --------------------------------
def _mbr_kernel(x_ref, mask_ref, w13_ref, b13_ref, w24_ref, b24_ref,
                wc_ref, bc_ref, o_ref, *, C, H, W):
    """Fused MBR forward for one batch element.

    x_ref    : (1, C, H*W)    f32 input (also the residual)
    mask_ref : (25, H*W)      f32 0/1 validity mask per 5x5 tap offset
    w*_ref   : (Cout, K*Cin)  bf16 BN-scale-folded conv weight matrices
    b*_ref   : (Cout, 1)      f32 folded BN biases
    o_ref    : (1, C, H*W)    f32 output (lane-dense last dim)
    """
    HW = H * W
    x = x_ref[0]              # (C, HW)  float32
    masks = mask_ref[...]     # (25, HW) float32

    def im2col(a, k):
        # (Cin, HW) -> (k*k*Cin, HW) bf16 patch matrix (tap-major, cin-minor).
        # out[:, h*W + w] of tap (dh, dw) = a[:, (h+dh)*W + (w+dw)], 0 outside.
        p = (k - 1) // 2
        pieces = []
        for dh in range(-p, p + 1):
            for dw in range(-p, p + 1):
                s = dh * W + dw                          # static shift
                rolled = a if s == 0 else pltpu.roll(a, (-s) % HW, axis=1)
                t = (dh + 2) * 5 + (dw + 2)              # index into 5x5 masks
                pieces.append(rolled * masks[t:t + 1])
        return jnp.concatenate(pieces, axis=0).astype(jnp.bfloat16)

    def conv(w_r, b_r, patches):
        # one fat bf16 MXU matmul per conv stage, f32 accumulate, f32 BN bias.
        return jnp.dot(w_r[...], patches,
                       preferred_element_type=jnp.float32) + b_r[...]

    # conv1(3x3)+bn1+relu and conv3(5x5)+bn3+relu share input x -> one matmul.
    a13 = jnp.maximum(conv(w13_ref, b13_ref, im2col(x, 5)), 0.0)   # (2C, HW)

    # conv2(3x3)+bn2 on a13[:C] and conv4(5x5)+bn4 on a13[C:] fused into one
    # matmul over the joint channel dim; its result IS cat([o1, o2]).
    cat = conv(w24_ref, b24_ref, im2col(a13, 5))                   # (2C, HW)

    # conv_cat(3x3)+bn, += residual(x), relu -- all in VMEM.
    out = conv(wc_ref, bc_ref, im2col(cat, 3)) + x                 # (C, HW)
    o_ref[0] = jnp.maximum(out, 0.0).astype(o_ref.dtype)


# ------------------------------ host-side prep ------------------------------
def _to_mat(w_hwio, scale):
    """HWIO conv weight with folded BN scale -> (Cout, KH*KW*Cin) bf16 matrix."""
    KH, KW, Cin, Cout = w_hwio.shape
    wf = w_hwio * scale                              # fold BN scale per Cout
    m = jnp.transpose(wf, (3, 0, 1, 2)).reshape(Cout, KH * KW * Cin)
    return m.astype(jnp.bfloat16)


def _boundary_masks(H, W, p):
    """((2p+1)^2, H*W) 0/1 masks: tap (dh,dw) valid at output pixel (h,w)."""
    hh = jnp.arange(H * W, dtype=jnp.int32) // W
    ww = jnp.arange(H * W, dtype=jnp.int32) % W
    rows = []
    for dh in range(-p, p + 1):
        for dw in range(-p, p + 1):
            rows.append((hh + dh >= 0) & (hh + dh < H) &
                        (ww + dw >= 0) & (ww + dw < W))
    return jnp.stack(rows).astype(jnp.float32)


@jax.jit
def mbr_forward(x_nchw, p):
    """MBR forward (upsample=None, stride=1, planes==inplanes path).  NCHW IO."""
    N, C, H, W = x_nchw.shape
    HW = H * W
    x = x_nchw.reshape(N, C, HW)          # NCHW -> (N, C, HW): free, lane-dense

    # Stage 1: conv1 (3x3) zero-embedded into the 5x5 tap grid so conv1/conv3
    # (same input) run as a single (2C, 25C) x (25C, HW) matmul.
    w13h = jnp.zeros((5, 5, C, 2 * C), p["w1"].dtype)
    w13h = w13h.at[1:4, 1:4, :, :C].set(p["w1"])
    w13h = w13h.at[:, :, :, C:].set(p["w3"])
    w13 = _to_mat(w13h, jnp.concatenate([p["s1"], p["s3"]]))
    b13 = jnp.concatenate([p["b1"], p["b3"]]).reshape(2 * C, 1)

    # Stage 2: conv2 (3x3 on branch-1 channels) and conv4 (5x5 on branch-2
    # channels) block-embedded into one (2C, 25*2C) matrix; off-branch taps
    # are zero so one matmul computes [conv2(o1); conv4(o2)] == torch.cat.
    w24h = jnp.zeros((5, 5, 2 * C, 2 * C), p["w2"].dtype)
    w24h = w24h.at[1:4, 1:4, :C, :C].set(p["w2"])
    w24h = w24h.at[:, :, C:, C:].set(p["w4"])
    w24 = _to_mat(w24h, jnp.concatenate([p["s2"], p["s4"]]))
    b24 = jnp.concatenate([p["b2"], p["b4"]]).reshape(2 * C, 1)

    # Stage 3: conv_cat (3x3, 2C -> C).
    wc, bc = _to_mat(p["wc"], p["sc"]), p["bc"].reshape(C, 1)

    masks = _boundary_masks(H, W, 2)      # (25, HW)

    def full(a):                          # whole-array (small constant) block
        return pl.BlockSpec(a.shape, lambda n: (0,) * a.ndim)

    out = pl.pallas_call(
        functools.partial(_mbr_kernel, C=C, H=H, W=W),
        out_shape=jax.ShapeDtypeStruct((N, C, HW), jnp.float32),
        grid=(N,),
        in_specs=[pl.BlockSpec((1, C, HW), lambda n: (n, 0, 0)),
                  full(masks), full(w13), full(b13), full(w24), full(b24),
                  full(wc), full(bc)],
        out_specs=pl.BlockSpec((1, C, HW), lambda n: (n, 0, 0)),
        compiler_params=pltpu.CompilerParams(
            dimension_semantics=("parallel",),       # v7x: 2 TCs split batch
            vmem_limit_bytes=32 * 1024 * 1024),
    )(x, masks, w13, b13, w24, b24, wc, bc)
    return out.reshape(N, C, H, W)


# ---------------------- pure-JAX reference (for checking) --------------------
def _conv_bn_ref(x, w, scale, bias, relu=False, residual=None):
    y = jax.lax.conv_general_dilated(
        x, w, window_strides=(1, 1), padding="SAME",
        dimension_numbers=("NHWC", "HWIO", "NHWC"))
    y = y * scale + bias
    if residual is not None:
        y = y + residual
    if relu:
        y = jnp.maximum(y, 0.0)
    return y


def mbr_ref(x_nchw, p):
    x = jnp.transpose(x_nchw, (0, 2, 3, 1))
    o1 = _conv_bn_ref(x, p["w1"], p["s1"], p["b1"], relu=True)
    o1 = _conv_bn_ref(o1, p["w2"], p["s2"], p["b2"])
    o2 = _conv_bn_ref(x, p["w3"], p["s3"], p["b3"], relu=True)
    o2 = _conv_bn_ref(o2, p["w4"], p["s4"], p["b4"])
    cat = jnp.concatenate([o1, o2], axis=-1)
    out = _conv_bn_ref(cat, p["wc"], p["sc"], p["bc"], relu=True, residual=x)
    return jnp.transpose(out, (0, 3, 1, 2))


# --------------------------- parameter construction --------------------------
def _fold_bn(gamma, beta, mean, var, eps=1e-5):
    scale = gamma / jnp.sqrt(var + eps)
    bias = beta - mean * scale
    return scale, bias


def make_params(key, inplanes, planes):
    ks = jax.random.split(key, 10)

    def conv_w(k, kh, kw, cin, cout):
        return 0.1 * jax.random.normal(k, (kh, kw, cin, cout), jnp.float32)

    def bn(k, c):
        k1, k2, k3, k4 = jax.random.split(k, 4)
        gamma = 1.0 + 0.1 * jax.random.normal(k1, (c,), jnp.float32)
        beta = 0.1 * jax.random.normal(k2, (c,), jnp.float32)
        mean = 0.1 * jax.random.normal(k3, (c,), jnp.float32)
        var = jax.random.uniform(k4, (c,), jnp.float32, 0.5, 1.5)
        return _fold_bn(gamma, beta, mean, var)

    p = {}
    p["w1"] = conv_w(ks[0], 3, 3, inplanes, inplanes)
    p["s1"], p["b1"] = bn(ks[1], inplanes)
    p["w2"] = conv_w(ks[2], 3, 3, inplanes, planes)
    p["s2"], p["b2"] = bn(ks[3], planes)
    p["w3"] = conv_w(ks[4], 5, 5, inplanes, inplanes)
    p["s3"], p["b3"] = bn(ks[5], inplanes)
    p["w4"] = conv_w(ks[6], 5, 5, inplanes, planes)
    p["s4"], p["b4"] = bn(ks[7], planes)
    p["wc"] = conv_w(ks[8], 3, 3, 2 * inplanes, inplanes)
    p["sc"], p["bc"] = bn(ks[9], inplanes)
    return p


if __name__ == "__main__":
    key = jax.random.PRNGKey(0)
    k_x, k_p = jax.random.split(key)

    N, C, H, W = 2, 4, 16, 16          # inplanes = planes = 4 (conv_cat needs it)
    x = jax.random.normal(k_x, (N, C, H, W), jnp.float32)
    params = make_params(k_p, inplanes=C, planes=C)

    out = jax.block_until_ready(mbr_forward(x, params))
    ref = jax.block_until_ready(mbr_ref(x, params))

    assert out.shape == (N, C, H, W), out.shape
    # bf16 MXU operands (f32 accumulation) vs. f32 reference -> looser tol.
    max_err = float(jnp.max(jnp.abs(out - ref)))
    assert jnp.allclose(out, ref, rtol=5e-2, atol=5e-2), max_err

    print("KERNEL_OK")
</pallas_src>

<mosaic_0001>
module attributes {stable_mosaic.version = 11 : i64} {
  func.func @_mbr_kernel(%arg0: i32, %arg1: memref<1x4x256xf32, #tpu.memory_space<vmem>>, %arg2: memref<25x256xf32, #tpu.memory_space<vmem>>, %arg3: memref<8x100xbf16, #tpu.memory_space<vmem>>, %arg4: memref<8x1xf32, #tpu.memory_space<vmem>>, %arg5: memref<8x200xbf16, #tpu.memory_space<vmem>>, %arg6: memref<8x1xf32, #tpu.memory_space<vmem>>, %arg7: memref<4x72xbf16, #tpu.memory_space<vmem>>, %arg8: memref<4x1xf32, #tpu.memory_space<vmem>>, %arg9: memref<1x4x256xf32, #tpu.memory_space<vmem>>) attributes {dimension_semantics = [#tpu.dimension_semantics<parallel>], iteration_bounds = array<i64: 2>, scalar_prefetch = 0 : i64, scratch_operands = 0 : i64, tpu.core_type = #tpu.core_type<tc>, window_params = [{transform_indices = @transform_0, window_bounds = array<i64: 1, 4, 256>}, {pipeline_mode = #tpu.pipeline_mode<synchronous>, transform_indices = @transform_1, window_bounds = array<i64: 25, 256>}, {pipeline_mode = #tpu.pipeline_mode<synchronous>, transform_indices = @transform_2, window_bounds = array<i64: 8, 100>}, {pipeline_mode = #tpu.pipeline_mode<synchronous>, transform_indices = @transform_3, window_bounds = array<i64: 8, 1>}, {pipeline_mode = #tpu.pipeline_mode<synchronous>, transform_indices = @transform_4, window_bounds = array<i64: 8, 200>}, {pipeline_mode = #tpu.pipeline_mode<synchronous>, transform_indices = @transform_5, window_bounds = array<i64: 8, 1>}, {pipeline_mode = #tpu.pipeline_mode<synchronous>, transform_indices = @transform_6, window_bounds = array<i64: 4, 72>}, {pipeline_mode = #tpu.pipeline_mode<synchronous>, transform_indices = @transform_7, window_bounds = array<i64: 4, 1>}, {transform_indices = @transform_8, window_bounds = array<i64: 1, 4, 256>}]} {
    %c0 = arith.constant 0 : index
    %c0_0 = arith.constant 0 : index
    %c0_1 = arith.constant 0 : index
    %0 = vector.load %arg1[%c0, %c0_0, %c0_1] : memref<1x4x256xf32, #tpu.memory_space<vmem>>, vector<1x4x256xf32>
    %1 = vector.shape_cast %0 : vector<1x4x256xf32> to vector<4x256xf32>
    %c0_2 = arith.constant 0 : index
    %c0_3 = arith.constant 0 : index
    %2 = vector.load %arg2[%c0_2, %c0_3] : memref<25x256xf32, #tpu.memory_space<vmem>>, vector<25x256xf32>
    %c34_i32 = arith.constant 34 : i32
    %3 = tpu.dynamic_rotate %1 by %c34_i32 dim 1 : vector<4x256xf32>, i32 -> vector<4x256xf32>
    %4 = vector.extract_strided_slice %2 {offsets = [0, 0], sizes = [1, 256], strides = [1, 1]} : vector<25x256xf32> to vector<1x256xf32>
    %5 = vector.broadcast %4 : vector<1x256xf32> to vector<4x256xf32>
    %6 = arith.mulf %3, %5 : vector<4x256xf32>
    %c33_i32 = arith.constant 33 : i32
    %7 = tpu.dynamic_rotate %1 by %c33_i32 dim 1 : vector<4x256xf32>, i32 -> vector<4x256xf32>
    %8 = vector.extract_strided_slice %2 {offsets = [1, 0], sizes = [1, 256], strides = [1, 1]} : vector<25x256xf32> to vector<1x256xf32>
    %9 = vector.broadcast %8 : vector<1x256xf32> to vector<4x256xf32>
    %10 = arith.mulf %7, %9 : vector<4x256xf32>
    %c32_i32 = arith.constant 32 : i32
    %11 = tpu.dynamic_rotate %1 by %c32_i32 dim 1 : vector<4x256xf32>, i32 -> vector<4x256xf32>
    %12 = vector.extract_strided_slice %2 {offsets = [2, 0], sizes = [1, 256], strides = [1, 1]} : vector<25x256xf32> to vector<1x256xf32>
    %13 = vector.broadcast %12 : vector<1x256xf32> to vector<4x256xf32>
    %14 = arith.mulf %11, %13 : vector<4x256xf32>
    %c31_i32 = arith.constant 31 : i32
    %15 = tpu.dynamic_rotate %1 by %c31_i32 dim 1 : vector<4x256xf32>, i32 -> vector<4x256xf32>
    %16 = vector.extract_strided_slice %2 {offsets = [3, 0], sizes = [1, 256], strides = [1, 1]} : vector<25x256xf32> to vector<1x256xf32>
    %17 = vector.broadcast %16 : vector<1x256xf32> to vector<4x256xf32>
    %18 = arith.mulf %15, %17 : vector<4x256xf32>
    %c30_i32 = arith.constant 30 : i32
    %19 = tpu.dynamic_rotate %1 by %c30_i32 dim 1 : vector<4x256xf32>, i32 -> vector<4x256xf32>
    %20 = vector.extract_strided_slice %2 {offsets = [4, 0], sizes = [1, 256], strides = [1, 1]} : vector<25x256xf32> to vector<1x256xf32>
    %21 = vector.broadcast %20 : vector<1x256xf32> to vector<4x256xf32>
    %22 = arith.mulf %19, %21 : vector<4x256xf32>
    %c18_i32 = arith.constant 18 : i32
    %23 = tpu.dynamic_rotate %1 by %c18_i32 dim 1 : vector<4x256xf32>, i32 -> vector<4x256xf32>
    %24 = vector.extract_strided_slice %2 {offsets = [5, 0], sizes = [1, 256], strides = [1, 1]} : vector<25x256xf32> to vector<1x256xf32>
    %25 = vector.broadcast %24 : vector<1x256xf32> to vector<4x256xf32>
    %26 = arith.mulf %23, %25 : vector<4x256xf32>
    %c17_i32 = arith.constant 17 : i32
    %27 = tpu.dynamic_rotate %1 by %c17_i32 dim 1 : vector<4x256xf32>, i32 -> vector<4x256xf32>
    %28 = vector.extract_strided_slice %2 {offsets = [6, 0], sizes = [1, 256], strides = [1, 1]} : vector<25x256xf32> to vector<1x256xf32>
    %29 = vector.broadcast %28 : vector<1x256xf32> to vector<4x256xf32>
    %30 = arith.mulf %27, %29 : vector<4x256xf32>
    %c16_i32 = arith.constant 16 : i32
    %31 = tpu.dynamic_rotate %1 by %c16_i32 dim 1 : vector<4x256xf32>, i32 -> vector<4x256xf32>
    %32 = vector.extract_strided_slice %2 {offsets = [7, 0], sizes = [1, 256], strides = [1, 1]} : vector<25x256xf32> to vector<1x256xf32>
    %33 = vector.broadcast %32 : vector<1x256xf32> to vector<4x256xf32>
    %34 = arith.mulf %31, %33 : vector<4x256xf32>
    %c15_i32 = arith.constant 15 : i32
    %35 = tpu.dynamic_rotate %1 by %c15_i32 dim 1 : vector<4x256xf32>, i32 -> vector<4x256xf32>
    %36 = vector.extract_strided_slice %2 {offsets = [8, 0], sizes = [1, 256], strides = [1, 1]} : vector<25x256xf32> to vector<1x256xf32>
    %37 = vector.broadcast %36 : vector<1x256xf32> to vector<4x256xf32>
    %38 = arith.mulf %35, %37 : vector<4x256xf32>
    %c14_i32 = arith.constant 14 : i32
    %39 = tpu.dynamic_rotate %1 by %c14_i32 dim 1 : vector<4x256xf32>, i32 -> vector<4x256xf32>
    %40 = vector.extract_strided_slice %2 {offsets = [9, 0], sizes = [1, 256], strides = [1, 1]} : vector<25x256xf32> to vector<1x256xf32>
    %41 = vector.broadcast %40 : vector<1x256xf32> to vector<4x256xf32>
    %42 = arith.mulf %39, %41 : vector<4x256xf32>
    %c2_i32 = arith.constant 2 : i32
    %43 = tpu.dynamic_rotate %1 by %c2_i32 dim 1 : vector<4x256xf32>, i32 -> vector<4x256xf32>
    %44 = vector.extract_strided_slice %2 {offsets = [10, 0], sizes = [1, 256], strides = [1, 1]} : vector<25x256xf32> to vector<1x256xf32>
    %45 = vector.broadcast %44 : vector<1x256xf32> to vector<4x256xf32>
    %46 = arith.mulf %43, %45 : vector<4x256xf32>
    %c1_i32 = arith.constant 1 : i32
    %47 = tpu.dynamic_rotate %1 by %c1_i32 dim 1 : vector<4x256xf32>, i32 -> vector<4x256xf32>
    %48 = vector.extract_strided_slice %2 {offsets = [11, 0], sizes = [1, 256], strides = [1, 1]} : vector<25x256xf32> to vector<1x256xf32>
    %49 = vector.broadcast %48 : vector<1x256xf32> to vector<4x256xf32>
    %50 = arith.mulf %47, %49 : vector<4x256xf32>
    %51 = vector.extract_strided_slice %2 {offsets = [12, 0], sizes = [1, 256], strides = [1, 1]} : vector<25x256xf32> to vector<1x256xf32>
    %52 = vector.broadcast %51 : vector<1x256xf32> to vector<4x256xf32>
    %53 = arith.mulf %1, %52 : vector<4x256xf32>
    %c255_i32 = arith.constant 255 : i32
    %54 = tpu.dynamic_rotate %1 by %c255_i32 dim 1 : vector<4x256xf32>, i32 -> vector<4x256xf32>
    %55 = vector.extract_strided_slice %2 {offsets = [13, 0], sizes = [1, 256], strides = [1, 1]} : vector<25x256xf32> to vector<1x256xf32>
    %56 = vector.broadcast %55 : vector<1x256xf32> to vector<4x256xf32>
    %57 = arith.mulf %54, %56 : vector<4x256xf32>
    %c254_i32 = arith.constant 254 : i32
    %58 = tpu.dynamic_rotate %1 by %c254_i32 dim 1 : vector<4x256xf32>, i32 -> vector<4x256xf32>
    %59 = vector.extract_strided_slice %2 {offsets = [14, 0], sizes = [1, 256], strides = [1, 1]} : vector<25x256xf32> to vector<1x256xf32>
    %60 = vector.broadcast %59 : vector<1x256xf32> to vector<4x256xf32>
    %61 = arith.mulf %58, %60 : vector<4x256xf32>
    %c242_i32 = arith.constant 242 : i32
    %62 = tpu.dynamic_rotate %1 by %c242_i32 dim 1 : vector<4x256xf32>, i32 -> vector<4x256xf32>
    %63 = vector.extract_strided_slice %2 {offsets = [15, 0], sizes = [1, 256], strides = [1, 1]} : vector<25x256xf32> to vector<1x256xf32>
    %64 = vector.broadcast %63 : vector<1x256xf32> to vector<4x256xf32>
    %65 = arith.mulf %62, %64 : vector<4x256xf32>
    %c241_i32 = arith.constant 241 : i32
    %66 = tpu.dynamic_rotate %1 by %c241_i32 dim 1 : vector<4x256xf32>, i32 -> vector<4x256xf32>
    %67 = vector.extract_strided_slice %2 {offsets = [16, 0], sizes = [1, 256], strides = [1, 1]} : vector<25x256xf32> to vector<1x256xf32>
    %68 = vector.broadcast %67 : vector<1x256xf32> to vector<4x256xf32>
    %69 = arith.mulf %66, %68 : vector<4x256xf32>
    %c240_i32 = arith.constant 240 : i32
    %70 = tpu.dynamic_rotate %1 by %c240_i32 dim 1 : vector<4x256xf32>, i32 -> vector<4x256xf32>
    %71 = vector.extract_strided_slice %2 {offsets = [17, 0], sizes = [1, 256], strides = [1, 1]} : vector<25x256xf32> to vector<1x256xf32>
    %72 = vector.broadcast %71 : vector<1x256xf32> to vector<4x256xf32>
    %73 = arith.mulf %70, %72 : vector<4x256xf32>
    %c239_i32 = arith.constant 239 : i32
    %74 = tpu.dynamic_rotate %1 by %c239_i32 dim 1 : vector<4x256xf32>, i32 -> vector<4x256xf32>
    %75 = vector.extract_strided_slice %2 {offsets = [18, 0], sizes = [1, 256], strides = [1, 1]} : vector<25x256xf32> to vector<1x256xf32>
    %76 = vector.broadcast %75 : vector<1x256xf32> to vector<4x256xf32>
    %77 = arith.mulf %74, %76 : vector<4x256xf32>
    %c238_i32 = arith.constant 238 : i32
    %78 = tpu.dynamic_rotate %1 by %c238_i32 dim 1 : vector<4x256xf32>, i32 -> vector<4x256xf32>
    %79 = vector.extract_strided_slice %2 {offsets = [19, 0], sizes = [1, 256], strides = [1, 1]} : vector<25x256xf32> to vector<1x256xf32>
    %80 = vector.broadcast %79 : vector<1x256xf32> to vector<4x256xf32>
    %81 = arith.mulf %78, %80 : vector<4x256xf32>
    %c226_i32 = arith.constant 226 : i32
    %82 = tpu.dynamic_rotate %1 by %c226_i32 dim 1 : vector<4x256xf32>, i32 -> vector<4x256xf32>
    %83 = vector.extract_strided_slice %2 {offsets = [20, 0], sizes = [1, 256], strides = [1, 1]} : vector<25x256xf32> to vector<1x256xf32>
    %84 = vector.broadcast %83 : vector<1x256xf32> to vector<4x256xf32>
    %85 = arith.mulf %82, %84 : vector<4x256xf32>
    %c225_i32 = arith.constant 225 : i32
    %86 = tpu.dynamic_rotate %1 by %c225_i32 dim 1 : vector<4x256xf32>, i32 -> vector<4x256xf32>
    %87 = vector.extract_strided_slice %2 {offsets = [21, 0], sizes = [1, 256], strides = [1, 1]} : vector<25x256xf32> to vector<1x256xf32>
    %88 = vector.broadcast %87 : vector<1x256xf32> to vector<4x256xf32>
    %89 = arith.mulf %86, %88 : vector<4x256xf32>
    %c224_i32 = arith.constant 224 : i32
    %90 = tpu.dynamic_rotate %1 by %c224_i32 dim 1 : vector<4x256xf32>, i32 -> vector<4x256xf32>
    %91 = vector.extract_strided_slice %2 {offsets = [22, 0], sizes = [1, 256], strides = [1, 1]} : vector<25x256xf32> to vector<1x256xf32>
    %92 = vector.broadcast %91 : vector<1x256xf32> to vector<4x256xf32>
    %93 = arith.mulf %90, %92 : vector<4x256xf32>
    %c223_i32 = arith.constant 223 : i32
    %94 = tpu.dynamic_rotate %1 by %c223_i32 dim 1 : vector<4x256xf32>, i32 -> vector<4x256xf32>
    %95 = vector.extract_strided_slice %2 {offsets = [23, 0], sizes = [1, 256], strides = [1, 1]} : vector<25x256xf32> to vector<1x256xf32>
    %96 = vector.broadcast %95 : vector<1x256xf32> to vector<4x256xf32>
    %97 = arith.mulf %94, %96 : vector<4x256xf32>
    %c222_i32 = arith.constant 222 : i32
    %98 = tpu.dynamic_rotate %1 by %c222_i32 dim 1 : vector<4x256xf32>, i32 -> vector<4x256xf32>
    %99 = vector.extract_strided_slice %2 {offsets = [24, 0], sizes = [1, 256], strides = [1, 1]} : vector<25x256xf32> to vector<1x256xf32>
    %100 = vector.broadcast %99 : vector<1x256xf32> to vector<4x256xf32>
    %101 = arith.mulf %98, %100 : vector<4x256xf32>
    %102 = tpu.concatenate %6, %10, %14, %18, %22, %26, %30, %34, %38, %42, %46, %50, %53, %57, %61, %65 in 0 : vector<4x256xf32>, vector<4x256xf32>, vector<4x256xf32>, vector<4x256xf32>, vector<4x256xf32>, vector<4x256xf32>, vector<4x256xf32>, vector<4x256xf32>, vector<4x256xf32>, vector<4x256xf32>, vector<4x256xf32>, vector<4x256xf32>, vector<4x256xf32>, vector<4x256xf32>, vector<4x256xf32>, vector<4x256xf32> -> vector<64x256xf32>
    %103 = tpu.concatenate %69, %73, %77, %81, %85, %89, %93, %97, %101 in 0 : vector<4x256xf32>, vector<4x256xf32>, vector<4x256xf32>, vector<4x256xf32>, vector<4x256xf32>, vector<4x256xf32>, vector<4x256xf32>, vector<4x256xf32>, vector<4x256xf32> -> vector<36x256xf32>
    %104 = tpu.concatenate %102, %103 in 0 : vector<64x256xf32>, vector<36x256xf32> -> vector<100x256xf32>
    %105 = arith.truncf %104 : vector<100x256xf32> to vector<100x256xbf16>
    %c0_4 = arith.constant 0 : index
    %c0_5 = arith.constant 0 : index
    %106 = vector.load %arg3[%c0_4, %c0_5] : memref<8x100xbf16, #tpu.memory_space<vmem>>, vector<8x100xbf16>
    %cst = arith.constant dense<0.000000e+00> : vector<8x256xf32>
    %107 = tpu.matmul %106, %105, %cst {dimension_numbers = #tpu.dot_dimension_numbers<[1], [0], [0], [1], [0, 0, 1, 1], [], []>} : vector<8x100xbf16>, vector<100x256xbf16>, vector<8x256xf32> -> vector<8x256xf32>
    %c0_6 = arith.constant 0 : index
    %c0_7 = arith.constant 0 : index
    %108 = vector.load %arg4[%c0_6, %c0_7] : memref<8x1xf32, #tpu.memory_space<vmem>>, vector<8x1xf32>
    %109 = vector.broadcast %108 : vector<8x1xf32> to vector<8x256xf32>
    %110 = arith.addf %107, %109 : vector<8x256xf32>
    %cst_8 = arith.constant 0.000000e+00 : f32
    %111 = vector.broadcast %cst_8 : f32 to vector<8x256xf32>
    %112 = arith.maximumf %110, %111 : vector<8x256xf32>
    %c34_i32_9 = arith.constant 34 : i32
    %113 = tpu.dynamic_rotate %112 by %c34_i32_9 dim 1 : vector<8x256xf32>, i32 -> vector<8x256xf32>
    %114 = vector.extract_strided_slice %2 {offsets = [0, 0], sizes = [1, 256], strides = [1, 1]} : vector<25x256xf32> to vector<1x256xf32>
    %115 = vector.broadcast %114 : vector<1x256xf32> to vector<8x256xf32>
    %116 = arith.mulf %113, %115 : vector<8x256xf32>
    %c33_i32_10 = arith.constant 33 : i32
    %117 = tpu.dynamic_rotate %112 by %c33_i32_10 dim 1 : vector<8x256xf32>, i32 -> vector<8x256xf32>
    %118 = vector.extract_strided_slice %2 {offsets = [1, 0], sizes = [1, 256], strides = [1, 1]} : vector<25x256xf32> to vector<1x256xf32>
    %119 = vector.broadcast %118 : vector<1x256xf32> to vector<8x256xf32>
    %120 = arith.mulf %117, %119 : vector<8x256xf32>
    %c32_i32_11 = arith.constant 32 : i32
    %121 = tpu.dynamic_rotate %112 by %c32_i32_11 dim 1 : vector<8x256xf32>, i32 -> vector<8x256xf32>
    %122 = vector.extract_strided_slice %2 {offsets = [2, 0], sizes = [1, 256], strides = [1, 1]} : vector<25x256xf32> to vector<1x256xf32>
    %123 = vector.broadcast %122 : vector<1x256xf32> to vector<8x256xf32>
    %124 = arith.mulf %121, %123 : vector<8x256xf32>
    %c31_i32_12 = arith.constant 31 : i32
    %125 = tpu.dynamic_rotate %112 by %c31_i32_12 dim 1 : vector<8x256xf32>, i32 -> vector<8x256xf32>
    %126 = vector.extract_strided_slice %2 {offsets = [3, 0], sizes = [1, 256], strides = [1, 1]} : vector<25x256xf32> to vector<1x256xf32>
    %127 = vector.broadcast %126 : vector<1x256xf32> to vector<8x256xf32>
    %128 = arith.mulf %125, %127 : vector<8x256xf32>
    %c30_i32_13 = arith.constant 30 : i32
    %129 = tpu.dynamic_rotate %112 by %c30_i32_13 dim 1 : vector<8x256xf32>, i32 -> vector<8x256xf32>
    %130 = vector.extract_strided_slice %2 {offsets = [4, 0], sizes = [1, 256], strides = [1, 1]} : vector<25x256xf32> to vector<1x256xf32>
    %131 = vector.broadcast %130 : vector<1x256xf32> to vector<8x256xf32>
    %132 = arith.mulf %129, %131 : vector<8x256xf32>
    %c18_i32_14 = arith.constant 18 : i32
    %133 = tpu.dynamic_rotate %112 by %c18_i32_14 dim 1 : vector<8x256xf32>, i32 -> vector<8x256xf32>
    %134 = vector.extract_strided_slice %2 {offsets = [5, 0], sizes = [1, 256], strides = [1, 1]} : vector<25x256xf32> to vector<1x256xf32>
    %135 = vector.broadcast %134 : vector<1x256xf32> to vector<8x256xf32>
    %136 = arith.mulf %133, %135 : vector<8x256xf32>
    %c17_i32_15 = arith.constant 17 : i32
    %137 = tpu.dynamic_rotate %112 by %c17_i32_15 dim 1 : vector<8x256xf32>, i32 -> vector<8x256xf32>
    %138 = vector.extract_strided_slice %2 {offsets = [6, 0], sizes = [1, 256], strides = [1, 1]} : vector<25x256xf32> to vector<1x256xf32>
    %139 = vector.broadcast %138 : vector<1x256xf32> to vector<8x256xf32>
    %140 = arith.mulf %137, %139 : vector<8x256xf32>
    %c16_i32_16 = arith.constant 16 : i32
    %141 = tpu.dynamic_rotate %112 by %c16_i32_16 dim 1 : vector<8x256xf32>, i32 -> vector<8x256xf32>
    %142 = vector.extract_strided_slice %2 {offsets = [7, 0], sizes = [1, 256], strides = [1, 1]} : vector<25x256xf32> to vector<1x256xf32>
    %143 = vector.broadcast %142 : vector<1x256xf32> to vector<8x256xf32>
    %144 = arith.mulf %141, %143 : vector<8x256xf32>
    %c15_i32_17 = arith.constant 15 : i32
    %145 = tpu.dynamic_rotate %112 by %c15_i32_17 dim 1 : vector<8x256xf32>, i32 -> vector<8x256xf32>
    %146 = vector.extract_strided_slice %2 {offsets = [8, 0], sizes = [1, 256], strides = [1, 1]} : vector<25x256xf32> to vector<1x256xf32>
    %147 = vector.broadcast %146 : vector<1x256xf32> to vector<8x256xf32>
    %148 = arith.mulf %145, %147 : vector<8x256xf32>
    %c14_i32_18 = arith.constant 14 : i32
    %149 = tpu.dynamic_rotate %112 by %c14_i32_18 dim 1 : vector<8x256xf32>, i32 -> vector<8x256xf32>
    %150 = vector.extract_strided_slice %2 {offsets = [9, 0], sizes = [1, 256], strides = [1, 1]} : vector<25x256xf32> to vector<1x256xf32>
    %151 = vector.broadcast %150 : vector<1x256xf32> to vector<8x256xf32>
    %152 = arith.mulf %149, %151 : vector<8x256xf32>
    %c2_i32_19 = arith.constant 2 : i32
    %153 = tpu.dynamic_rotate %112 by %c2_i32_19 dim 1 : vector<8x256xf32>, i32 -> vector<8x256xf32>
    %154 = vector.extract_strided_slice %2 {offsets = [10, 0], sizes = [1, 256], strides = [1, 1]} : vector<25x256xf32> to vector<1x256xf32>
    %155 = vector.broadcast %154 : vector<1x256xf32> to vector<8x256xf32>
    %156 = arith.mulf %153, %155 : vector<8x256xf32>
    %c1_i32_20 = arith.constant 1 : i32
    %157 = tpu.dynamic_rotate %112 by %c1_i32_20 dim 1 : vector<8x256xf32>, i32 -> vector<8x256xf32>
    %158 = vector.extract_strided_slice %2 {offsets = [11, 0], sizes = [1, 256], strides = [1, 1]} : vector<25x256xf32> to vector<1x256xf32>
    %159 = vector.broadcast %158 : vector<1x256xf32> to vector<8x256xf32>
    %160 = arith.mulf %157, %159 : vector<8x256xf32>
    %161 = vector.extract_strided_slice %2 {offsets = [12, 0], sizes = [1, 256], strides = [1, 1]} : vector<25x256xf32> to vector<1x256xf32>
    %162 = vector.broadcast %161 : vector<1x256xf32> to vector<8x256xf32>
    %163 = arith.mulf %112, %162 : vector<8x256xf32>
    %c255_i32_21 = arith.constant 255 : i32
    %164 = tpu.dynamic_rotate %112 by %c255_i32_21 dim 1 : vector<8x256xf32>, i32 -> vector<8x256xf32>
    %165 = vector.extract_strided_slice %2 {offsets = [13, 0], sizes = [1, 256], strides = [1, 1]} : vector<25x256xf32> to vector<1x256xf32>
    %166 = vector.broadcast %165 : vector<1x256xf32> to vector<8x256xf32>
    %167 = arith.mulf %164, %166 : vector<8x256xf32>
    %c254_i32_22 = arith.constant 254 : i32
    %168 = tpu.dynamic_rotate %112 by %c254_i32_22 dim 1 : vector<8x256xf32>, i32 -> vector<8x256xf32>
    %169 = vector.extract_strided_slice %2 {offsets = [14, 0], sizes = [1, 256], strides = [1, 1]} : vector<25x256xf32> to vector<1x256xf32>
    %170 = vector.broadcast %169 : vector<1x256xf32> to vector<8x256xf32>
    %171 = arith.mulf %168, %170 : vector<8x256xf32>
    %c242_i32_23 = arith.constant 242 : i32
    %172 = tpu.dynamic_rotate %112 by %c242_i32_23 dim 1 : vector<8x256xf32>, i32 -> vector<8x256xf32>
    %173 = vector.extract_strided_slice %2 {offsets = [15, 0], sizes = [1, 256], strides = [1, 1]} : vector<25x256xf32> to vector<1x256xf32>
    %174 = vector.broadcast %173 : vector<1x256xf32> to vector<8x256xf32>
    %175 = arith.mulf %172, %174 : vector<8x256xf32>
    %c241_i32_24 = arith.constant 241 : i32
    %176 = tpu.dynamic_rotate %112 by %c241_i32_24 dim 1 : vector<8x256xf32>, i32 -> vector<8x256xf32>
    %177 = vector.extract_strided_slice %2 {offsets = [16, 0], sizes = [1, 256], strides = [1, 1]} : vector<25x256xf32> to vector<1x256xf32>
    %178 = vector.broadcast %177 : vector<1x256xf32> to vector<8x256xf32>
    %179 = arith.mulf %176, %178 : vector<8x256xf32>
    %c240_i32_25 = arith.constant 240 : i32
    %180 = tpu.dynamic_rotate %112 by %c240_i32_25 dim 1 : vector<8x256xf32>, i32 -> vector<8x256xf32>
    %181 = vector.extract_strided_slice %2 {offsets = [17, 0], sizes = [1, 256], strides = [1, 1]} : vector<25x256xf32> to vector<1x256xf32>
    %182 = vector.broadcast %181 : vector<1x256xf32> to vector<8x256xf32>
    %183 = arith.mulf %180, %182 : vector<8x256xf32>
    %c239_i32_26 = arith.constant 239 : i32
    %184 = tpu.dynamic_rotate %112 by %c239_i32_26 dim 1 : vector<8x256xf32>, i32 -> vector<8x256xf32>
    %185 = vector.extract_strided_slice %2 {offsets = [18, 0], sizes = [1, 256], strides = [1, 1]} : vector<25x256xf32> to vector<1x256xf32>
    %186 = vector.broadcast %185 : vector<1x256xf32> to vector<8x256xf32>
    %187 = arith.mulf %184, %186 : vector<8x256xf32>
    %c238_i32_27 = arith.constant 238 : i32
    %188 = tpu.dynamic_rotate %112 by %c238_i32_27 dim 1 : vector<8x256xf32>, i32 -> vector<8x256xf32>
    %189 = vector.extract_strided_slice %2 {offsets = [19, 0], sizes = [1, 256], strides = [1, 1]} : vector<25x256xf32> to vector<1x256xf32>
    %190 = vector.broadcast %189 : vector<1x256xf32> to vector<8x256xf32>
    %191 = arith.mulf %188, %190 : vector<8x256xf32>
    %c226_i32_28 = arith.constant 226 : i32
    %192 = tpu.dynamic_rotate %112 by %c226_i32_28 dim 1 : vector<8x256xf32>, i32 -> vector<8x256xf32>
    %193 = vector.extract_strided_slice %2 {offsets = [20, 0], sizes = [1, 256], strides = [1, 1]} : vector<25x256xf32> to vector<1x256xf32>
    %194 = vector.broadcast %193 : vector<1x256xf32> to vector<8x256xf32>
    %195 = arith.mulf %192, %194 : vector<8x256xf32>
    %c225_i32_29 = arith.constant 225 : i32
    %196 = tpu.dynamic_rotate %112 by %c225_i32_29 dim 1 : vector<8x256xf32>, i32 -> vector<8x256xf32>
    %197 = vector.extract_strided_slice %2 {offsets = [21, 0], sizes = [1, 256], strides = [1, 1]} : vector<25x256xf32> to vector<1x256xf32>
    %198 = vector.broadcast %197 : vector<1x256xf32> to vector<8x256xf32>
    %199 = arith.mulf %196, %198 : vector<8x256xf32>
    %c224_i32_30 = arith.constant 224 : i32
    %200 = tpu.dynamic_rotate %112 by %c224_i32_30 dim 1 : vector<8x256xf32>, i32 -> vector<8x256xf32>
    %201 = vector.extract_strided_slice %2 {offsets = [22, 0], sizes = [1, 256], strides = [1, 1]} : vector<25x256xf32> to vector<1x256xf32>
    %202 = vector.broadcast %201 : vector<1x256xf32> to vector<8x256xf32>
    %203 = arith.mulf %200, %202 : vector<8x256xf32>
    %c223_i32_31 = arith.constant 223 : i32
    %204 = tpu.dynamic_rotate %112 by %c223_i32_31 dim 1 : vector<8x256xf32>, i32 -> vector<8x256xf32>
    %205 = vector.extract_strided_slice %2 {offsets = [23, 0], sizes = [1, 256], strides = [1, 1]} : vector<25x256xf32> to vector<1x256xf32>
    %206 = vector.broadcast %205 : vector<1x256xf32> to vector<8x256xf32>
    %207 = arith.mulf %204, %206 : vector<8x256xf32>
    %c222_i32_32 = arith.constant 222 : i32
    %208 = tpu.dynamic_rotate %112 by %c222_i32_32 dim 1 : vector<8x256xf32>, i32 -> vector<8x256xf32>
    %209 = vector.extract_strided_slice %2 {offsets = [24, 0], sizes = [1, 256], strides = [1, 1]} : vector<25x256xf32> to vector<1x256xf32>
    %210 = vector.broadcast %209 : vector<1x256xf32> to vector<8x256xf32>
    %211 = arith.mulf %208, %210 : vector<8x256xf32>
    %212 = tpu.concatenate %116, %120, %124, %128, %132, %136, %140, %144, %148, %152, %156, %160, %163, %167, %171, %175 in 0 : vector<8x256xf32>, vector<8x256xf32>, vector<8x256xf32>, vector<8x256xf32>, vector<8x256xf32>, vector<8x256xf32>, vector<8x256xf32>, vector<8x256xf32>, vector<8x256xf32>, vector<8x256xf32>, vector<8x256xf32>, vector<8x256xf32>, vector<8x256xf32>, vector<8x256xf32>, vector<8x256xf32>, vector<8x256xf32> -> vector<128x256xf32>
    %213 = tpu.concatenate %179, %183, %187, %191, %195, %199, %203, %207, %211 in 0 : vector<8x256xf32>, vector<8x256xf32>, vector<8x256xf32>, vector<8x256xf32>, vector<8x256xf32>, vector<8x256xf32>, vector<8x256xf32>, vector<8x256xf32>, vector<8x256xf32> -> vector<72x256xf32>
    %214 = tpu.concatenate %212, %213 in 0 : vector<128x256xf32>, vector<72x256xf32> -> vector<200x256xf32>
    %215 = arith.truncf %214 : vector<200x256xf32> to vector<200x256xbf16>
    %c0_33 = arith.constant 0 : index
    %c0_34 = arith.constant 0 : index
    %216 = vector.load %arg5[%c0_33, %c0_34] : memref<8x200xbf16, #tpu.memory_space<vmem>>, vector<8x200xbf16>
    %cst_35 = arith.constant dense<0.000000e+00> : vector<8x256xf32>
    %217 = tpu.matmul %216, %215, %cst_35 {dimension_numbers = #tpu.dot_dimension_numbers<[1], [0], [0], [1], [0, 0, 1, 1], [], []>} : vector<8x200xbf16>, vector<200x256xbf16>, vector<8x256xf32> -> vector<8x256xf32>
    %c0_36 = arith.constant 0 : index
    %c0_37 = arith.constant 0 : index
    %218 = vector.load %arg6[%c0_36, %c0_37] : memref<8x1xf32, #tpu.memory_space<vmem>>, vector<8x1xf32>
    %219 = vector.broadcast %218 : vector<8x1xf32> to vector<8x256xf32>
    %220 = arith.addf %217, %219 : vector<8x256xf32>
    %c17_i32_38 = arith.constant 17 : i32
    %221 = tpu.dynamic_rotate %220 by %c17_i32_38 dim 1 : vector<8x256xf32>, i32 -> vector<8x256xf32>
    %222 = vector.extract_strided_slice %2 {offsets = [6, 0], sizes = [1, 256], strides = [1, 1]} : vector<25x256xf32> to vector<1x256xf32>
    %223 = vector.broadcast %222 : vector<1x256xf32> to vector<8x256xf32>
    %224 = arith.mulf %221, %223 : vector<8x256xf32>
    %c16_i32_39 = arith.constant 16 : i32
    %225 = tpu.dynamic_rotate %220 by %c16_i32_39 dim 1 : vector<8x256xf32>, i32 -> vector<8x256xf32>
    %226 = vector.extract_strided_slice %2 {offsets = [7, 0], sizes = [1, 256], strides = [1, 1]} : vector<25x256xf32> to vector<1x256xf32>
    %227 = vector.broadcast %226 : vector<1x256xf32> to vector<8x256xf32>
    %228 = arith.mulf %225, %227 : vector<8x256xf32>
    %c15_i32_40 = arith.constant 15 : i32
    %229 = tpu.dynamic_rotate %220 by %c15_i32_40 dim 1 : vector<8x256xf32>, i32 -> vector<8x256xf32>
    %230 = vector.extract_strided_slice %2 {offsets = [8, 0], sizes = [1, 256], strides = [1, 1]} : vector<25x256xf32> to vector<1x256xf32>
    %231 = vector.broadcast %230 : vector<1x256xf32> to vector<8x256xf32>
    %232 = arith.mulf %229, %231 : vector<8x256xf32>
    %c1_i32_41 = arith.constant 1 : i32
    %233 = tpu.dynamic_rotate %220 by %c1_i32_41 dim 1 : vector<8x256xf32>, i32 -> vector<8x256xf32>
    %234 = vector.extract_strided_slice %2 {offsets = [11, 0], sizes = [1, 256], strides = [1, 1]} : vector<25x256xf32> to vector<1x256xf32>
    %235 = vector.broadcast %234 : vector<1x256xf32> to vector<8x256xf32>
    %236 = arith.mulf %233, %235 : vector<8x256xf32>
    %237 = vector.extract_strided_slice %2 {offsets = [12, 0], sizes = [1, 256], strides = [1, 1]} : vector<25x256xf32> to vector<1x256xf32>
    %238 = vector.broadcast %237 : vector<1x256xf32> to vector<8x256xf32>
    %239 = arith.mulf %220, %238 : vector<8x256xf32>
    %c255_i32_42 = arith.constant 255 : i32
    %240 = tpu.dynamic_rotate %220 by %c255_i32_42 dim 1 : vector<8x256xf32>, i32 -> vector<8x256xf32>
    %241 = vector.extract_strided_slice %2 {offsets = [13, 0], sizes = [1, 256], strides = [1, 1]} : vector<25x256xf32> to vector<1x256xf32>
    %242 = vector.broadcast %241 : vector<1x256xf32> to vector<8x256xf32>
    %243 = arith.mulf %240, %242 : vector<8x256xf32>
    %c241_i32_43 = arith.constant 241 : i32
    %244 = tpu.dynamic_rotate %220 by %c241_i32_43 dim 1 : vector<8x256xf32>, i32 -> vector<8x256xf32>
    %245 = vector.extract_strided_slice %2 {offsets = [16, 0], sizes = [1, 256], strides = [1, 1]} : vector<25x256xf32> to vector<1x256xf32>
    %246 = vector.broadcast %245 : vector<1x256xf32> to vector<8x256xf32>
    %247 = arith.mulf %244, %246 : vector<8x256xf32>
    %c240_i32_44 = arith.constant 240 : i32
    %248 = tpu.dynamic_rotate %220 by %c240_i32_44 dim 1 : vector<8x256xf32>, i32 -> vector<8x256xf32>
    %249 = vector.extract_strided_slice %2 {offsets = [17, 0], sizes = [1, 256], strides = [1, 1]} : vector<25x256xf32> to vector<1x256xf32>
    %250 = vector.broadcast %249 : vector<1x256xf32> to vector<8x256xf32>
    %251 = arith.mulf %248, %250 : vector<8x256xf32>
    %c239_i32_45 = arith.constant 239 : i32
    %252 = tpu.dynamic_rotate %220 by %c239_i32_45 dim 1 : vector<8x256xf32>, i32 -> vector<8x256xf32>
    %253 = vector.extract_strided_slice %2 {offsets = [18, 0], sizes = [1, 256], strides = [1, 1]} : vector<25x256xf32> to vector<1x256xf32>
    %254 = vector.broadcast %253 : vector<1x256xf32> to vector<8x256xf32>
    %255 = arith.mulf %252, %254 : vector<8x256xf32>
    %256 = tpu.concatenate %224, %228, %232, %236, %239, %243, %247, %251, %255 in 0 : vector<8x256xf32>, vector<8x256xf32>, vector<8x256xf32>, vector<8x256xf32>, vector<8x256xf32>, vector<8x256xf32>, vector<8x256xf32>, vector<8x256xf32>, vector<8x256xf32> -> vector<72x256xf32>
    %257 = arith.truncf %256 : vector<72x256xf32> to vector<72x256xbf16>
    %c0_46 = arith.constant 0 : index
    %c0_47 = arith.constant 0 : index
    %258 = vector.load %arg7[%c0_46, %c0_47] : memref<4x72xbf16, #tpu.memory_space<vmem>>, vector<4x72xbf16>
    %cst_48 = arith.constant dense<0.000000e+00> : vector<4x256xf32>
    %259 = tpu.matmul %258, %257, %cst_48 {dimension_numbers = #tpu.dot_dimension_numbers<[1], [0], [0], [1], [0, 0, 1, 1], [], []>} : vector<4x72xbf16>, vector<72x256xbf16>, vector<4x256xf32> -> vector<4x256xf32>
    %c0_49 = arith.constant 0 : index
    %c0_50 = arith.constant 0 : index
    %260 = vector.load %arg8[%c0_49, %c0_50] : memref<4x1xf32, #tpu.memory_space<vmem>>, vector<4x1xf32>
    %261 = vector.broadcast %260 : vector<4x1xf32> to vector<4x256xf32>
    %262 = arith.addf %259, %261 : vector<4x256xf32>
    %263 = arith.addf %262, %1 : vector<4x256xf32>
    %cst_51 = arith.constant 0.000000e+00 : f32
    %264 = vector.broadcast %cst_51 : f32 to vector<4x256xf32>
    %265 = arith.maximumf %263, %264 : vector<4x256xf32>
    %c0_52 = arith.constant 0 : index
    %c0_53 = arith.constant 0 : index
    %c0_54 = arith.constant 0 : index
    %266 = vector.load %arg9[%c0_52, %c0_53, %c0_54] : memref<1x4x256xf32, #tpu.memory_space<vmem>>, vector<1x4x256xf32>
    %267 = vector.shape_cast %266 : vector<1x4x256xf32> to vector<4x256xf32>
    %268 = vector.shape_cast %265 : vector<4x256xf32> to vector<1x4x256xf32>
    tpu.vector_store %arg9[%c0_52, %c0_53, %c0_54], %268 {strides = array<i32>} : memref<1x4x256xf32, #tpu.memory_space<vmem>>, vector<1x4x256xf32>,
    return
  }
  func.func @transform_0(%arg0: i32) -> (i32, i32, i32) {
    %c0_i32 = arith.constant 0 : i32
    %c0_i32_0 = arith.constant 0 : i32
    %c0_i32_1 = arith.constant 0 : i32
    return %arg0, %c0_i32, %c0_i32_0 : i32, i32, i32
  }
  func.func @transform_1(%arg0: i32) -> (i32, i32) {
    %c0_i32 = arith.constant 0 : i32
    %c0_i32_0 = arith.constant 0 : i32
    %c0_i32_1 = arith.constant 0 : i32
    return %c0_i32, %c0_i32_0 : i32, i32
  }
  func.func @transform_2(%arg0: i32) -> (i32, i32) {
    %c0_i32 = arith.constant 0 : i32
    %c0_i32_0 = arith.constant 0 : i32
    %c0_i32_1 = arith.constant 0 : i32
    return %c0_i32, %c0_i32_0 : i32, i32
  }
  func.func @transform_3(%arg0: i32) -> (i32, i32) {
    %c0_i32 = arith.constant 0 : i32
    %c0_i32_0 = arith.constant 0 : i32
    %c0_i32_1 = arith.constant 0 : i32
    return %c0_i32, %c0_i32_0 : i32, i32
  }
  func.func @transform_4(%arg0: i32) -> (i32, i32) {
    %c0_i32 = arith.constant 0 : i32
    %c0_i32_0 = arith.constant 0 : i32
    %c0_i32_1 = arith.constant 0 : i32
    return %c0_i32, %c0_i32_0 : i32, i32
  }
  func.func @transform_5(%arg0: i32) -> (i32, i32) {
    %c0_i32 = arith.constant 0 : i32
    %c0_i32_0 = arith.constant 0 : i32
    %c0_i32_1 = arith.constant 0 : i32
    return %c0_i32, %c0_i32_0 : i32, i32
  }
  func.func @transform_6(%arg0: i32) -> (i32, i32) {
    %c0_i32 = arith.constant 0 : i32
    %c0_i32_0 = arith.constant 0 : i32
    %c0_i32_1 = arith.constant 0 : i32
    return %c0_i32, %c0_i32_0 : i32, i32
  }
  func.func @transform_7(%arg0: i32) -> (i32, i32) {
    %c0_i32 = arith.constant 0 : i32
    %c0_i32_0 = arith.constant 0 : i32
    %c0_i32_1 = arith.constant 0 : i32
    return %c0_i32, %c0_i32_0 : i32, i32
  }
  func.func @transform_8(%arg0: i32) -> (i32, i32, i32) {
    %c0_i32 = arith.constant 0 : i32
    %c0_i32_0 = arith.constant 0 : i32
    %c0_i32_1 = arith.constant 0 : i32
    return %arg0, %c0_i32, %c0_i32_0 : i32, i32, i32
  }
}

</mosaic_0001>

<bundles_post_ra>
// kernel: mbr_forward.1
= control target key start
LH: loop header
LB: loop body
LE: loop exit
PB: predicated region body
PF: predicated region fallthrough
CT: control target
= control target key end

     0   :  { %s1492_s27 = smov 0   ;;  %s2469_s0 = inlined_call_operand.vmem [shape: f32[2,4,256], index: 0, kind: input, shape index: {}]   ;;  %s2470_s1 = inlined_call_operand.vmem [shape: f32[25,256], index: 1, kind: input, shape index: {}]   ;;  %s2471_s2 = inlined_call_operand.vmem [shape: bf16[8,100], index: 2, kind: input, shape index: {}]   ;;  %s2472_s3 = inlined_call_operand.vmem [shape: f32[8,1], index: 3, kind: input, shape index: {}]   ;;  %s2473_s4 = inlined_call_operand.vmem [shape: bf16[8,200], index: 4, kind: input, shape index: {}]   ;;  %s2474_s5 = inlined_call_operand.vmem [shape: f32[8,1], index: 5, kind: input, shape index: {}]   ;;  %s2475_s6 = inlined_call_operand.vmem [shape: bf16[4,72], index: 6, kind: input, shape index: {}]   ;;  %s2476_s7 = inlined_call_operand.vmem [shape: f32[4,1], index: 7, kind: input, shape index: {}]   ;;  %s2477_s8 = inlined_call_operand.vmem [shape: f32[2,4,256], index: 8, kind: output, shape index: {}]  }
   0x1 LB: > { %s1357_s28 = sadd.s32 4294967295, %s1420_s27   ;;  %p1361_p0 = scmp.ge.s32.totalorder %s1420_s27, 1  ;;  %s1420_s27 = sphi %s1492_s27, %s18_s27  }
   0x2   : > { %p262_p1 = scmp.lt.s32.totalorder %s1420_s27, 3 }
   0x4   : > { %p263_p2 = pnand %p1361_p0, %p262_p1 }
   0x6   : > { %266 = sbr.rel (%p263_p2) target bundleno = 1189 (0x4a5), region = 52 }
   0xb   : > { %p296_p3 = scmp.lt.s32.totalorder %s1357_s28, 1  ;;  %s2481_s11 = smov 30   ;;  %v326_v42 = vlaneseq  ;;  %v1599_v54 = vld [vmem:[%s2470_s1] sm:$0xff]  ;;  %v1604_v55 = vld [vmem:[%s2470_s1 + $0x8] sm:$0xff]  ;;  %vm516_vm4 = vcmask 1043456  }
   0xc   : > { %s2479_s12 = smov 18   ;;  %s1424_s13 = smov 17   ;;  %v2496_v60 = vperm.slane %v1599_v54, 5  ;;  %v2495_v61 = vperm.slane %v1604_v55, 5 }
   0xd   : > { %s2630_s28 = smov (!%p296_p3, %s1357_s28), 1  ;;  %s2483_s14 = smov 16   ;;  %v1580_v44 = vand.u32 127, %v326_v42 }
   0xe   : > { %s2478_s29 = sshll.u32 %s2630_s28, 3  ;;  %s1426_s15 = smov 15  }
   0xf   : > { %s300_s10 = scalar_lea.vmem %s2469_s0, %s2478_s29  ;;  %s1427_s16 = smov 14   ;;  %vm2508_vm0 = vcmp.lt.s32.totalorder %v1580_v44, 30  ;;  %vm2506_vm1 = vcmp.lt.s32.totalorder %v1580_v44, 18  ;;  %vm2509_vm2 = vcmp.lt.s32.totalorder %v1580_v44, 16  ;;  %vm2533_vm3 = vcmp.lt.s32.totalorder %v1580_v44, 15 }
  0x10   : > { %v1508_v0 = vld [vmem:[%s300_s10] sm:$0xff]  ;;  %s1428_s17 = smov 2   ;;  %s1429_s18 = smov 1   ;;  %vm2527_vm5 = vcmp.lt.s32.totalorder %v1580_v44, 14  ;;  %vm488_vm6 = vcmp.lt.s32.totalorder %v1580_v44, 2  ;;  %vm504_vm7 = vcmp.lt.s32.totalorder %v1580_v44, 1 }
  0x11   : > { %317 = vst [vmem:[#allocation1] ss:$2 sm:$0xff] %v1508_v0  ;;  %s1430_s19 = smov 127   ;;  %s1431_s20 = smov 126   ;;  %vm529_vm8 = vcmp.lt.s32.totalorder %v1580_v44, 127  ;;  %vm545_vm9 = vcmp.lt.s32.totalorder %v1580_v44, 126 }
  0x12   : > { %s1432_s21 = smov 114   ;;  %s1433_s22 = smov 113   ;;  %vm561_vm10 = vcmp.lt.s32.totalorder %v1580_v44, 114  ;;  %vm2526_vm11 = vcmp.lt.s32.totalorder %v1580_v44, 112  ;;  %vm2513_vm12 = vcmp.lt.s32.totalorder %v1580_v44, 113  ;;  %vm609_vm13 = vcmp.lt.s32.totalorder %v1580_v44, 111 }
  0x13   : > { %s2485_s23 = smov 112   ;;  %s1435_s24 = smov 111   ;;  %vm625_vm14 = vcmp.lt.s32.totalorder %v1580_v44, 110  ;;  %vm689_vm15 = vcmp.lt.s32.totalorder %v1580_v44, 95 }
  0x14   : > { %s1436_s25 = smov 110   ;;  %s1437_s26 = smov 98  }
  0x15   : > { %s1438_s30 = smov 97   ;;  %s2489_s29 = smov 33  }
  0x16   : > { %s2493_s9 = smov 32   ;;  %s2487_s10 = smov 34  }
  0x18   : > { %v1511_v1 = vld.sshfl [vmem:[#allocation1] sm:$0xff pattern:$0x75316420]  ;;  %v1513_v2 = vld.sshfl [vmem:[#allocation1 + $0x8] sm:$0xff pattern:$0x75316420] }
  0x19   : > { %335 = vst [vmem:[#allocation1] ss:$2 sm:$0xff] %v1508_v0 }
  0x20   : > { %v1516_v3 = vld.sshfl [vmem:[#allocation1] sm:$0xff pattern:$0x75316420]  ;;  %v1518_v4 = vld.sshfl [vmem:[#allocation1 + $0x8] sm:$0xff pattern:$0x75316420] }
  0x21   : > { %351 = vst [vmem:[#allocation1] ss:$2 sm:$0xff] %v1508_v0 }
  0x28   : > { %v1521_v5 = vld.sshfl [vmem:[#allocation1] sm:$0xff pattern:$0x75316420]  ;;  %v1523_v6 = vld.sshfl [vmem:[#allocation1 + $0x8] sm:$0xff pattern:$0x75316420] }
  0x29   : > { %367 = vst [vmem:[#allocation1] ss:$2 sm:$0xff] %v1508_v0 }
  0x30   : > { %v1526_v7 = vld.sshfl [vmem:[#allocation1] sm:$0xff pattern:$0x75316420]  ;;  %v1528_v8 = vld.sshfl [vmem:[#allocation1 + $0x8] sm:$0xff pattern:$0x75316420] }
  0x31   : > { %383 = vst [vmem:[#allocation1] ss:$2 sm:$0xff] %v1508_v0 }
  0x38   : > { %v385_v9 = vld.sshfl [vmem:[#allocation1 + $0x8] sm:$0xff pattern:$0x75316420]  ;;  %v384_v10 = vld.sshfl [vmem:[#allocation1] sm:$0xff pattern:$0x75316420] }
  0x39   : > { %390 = vrot.lane.b32.xlu1 %v385_v9, %s2481_s11  ;;  %388 = vrot.lane.b32.xlu0 %v384_v10, %s2481_s11  ;;  %399 = vst [vmem:[#allocation1] ss:$2 sm:$0xff] %v1508_v0  ;;  %s1439_s11 = smov 96   ;;  %v2498_v9 = vperm.slane %v1599_v54, 4  ;;  %v2497_v10 = vperm.slane %v1604_v55, 4 }
  0x40   : > { %v400_v11 = vld.sshfl [vmem:[#allocation1] sm:$0xff pattern:$0x75316420]  ;;  %v401_v12 = vld.sshfl [vmem:[#allocation1 + $0x8] sm:$0xff pattern:$0x75316420] }
  0x41   : > { %415 = vst [vmem:[#allocation1] ss:$2 sm:$0xff] %v1508_v0  ;;  %406 = vrot.lane.b32.xlu0 %v401_v12, %s2479_s12  ;;  %404 = vrot.lane.b32.xlu2 %v400_v11, %s2479_s12  ;;  %s2491_s12 = smov 31  }
  0x48   : > { %v416_v13 = vld.sshfl [vmem:[#allocation1] sm:$0xff pattern:$0x75316420]  ;;  %v1537_v14 = vld.sshfl [vmem:[#allocation1 + $0x8] sm:$0xff pattern:$0x75316420] }
  0x49   : > { %431 = vst [vmem:[#allocation1] ss:$2 sm:$0xff] %v1508_v0  ;;  %420 = vrot.lane.b32.xlu2 %v416_v13, %s1424_s13 }
  0x50   : > { %v432_v15 = vld.sshfl [vmem:[#allocation1] sm:$0xff pattern:$0x75316420]  ;;  %v433_v16 = vld.sshfl [vmem:[#allocation1 + $0x8] sm:$0xff pattern:$0x75316420] }
  0x51   : > { %436 = vrot.lane.b32.xlu1 %v432_v15, %s2483_s14  ;;  %447 = vst [vmem:[#allocation1] ss:$2 sm:$0xff] %v1508_v0  ;;  %438 = vrot.lane.b32.xlu2 %v433_v16, %s2483_s14  ;;  %v1633_v16 = vld [vmem:[%s2470_s1 + $0x10] sm:$0xff]  ;;  %s1442_s14 = smov 94  }
  0x58   : > { %v448_v17 = vld.sshfl [vmem:[#allocation1] sm:$0xff pattern:$0x75316420]  ;;  %v449_v18 = vld.sshfl [vmem:[#allocation1 + $0x8] sm:$0xff pattern:$0x75316420] }
  0x59   : > { %452 = vrot.lane.b32.xlu1 %v448_v17, %s1426_s15  ;;  %463 = vst [vmem:[#allocation1] ss:$2 sm:$0xff] %v1508_v0  ;;  %454 = vrot.lane.b32.xlu2 %v449_v18, %s1426_s15  ;;  %v1638_v17 = vld [vmem:[%s2470_s1 + $0x18] sm:$0xff]  ;;  %v1643_v18 = vperm.slane %v1633_v16, 4 }
  0x60   : > { %v464_v19 = vld.sshfl [vmem:[#allocation1] sm:$0xff pattern:$0x75316420]  ;;  %v465_v20 = vld.sshfl [vmem:[#allocation1 + $0x8] sm:$0xff pattern:$0x75316420] }
  0x61   : > { %468 = vrot.lane.b32.xlu0 %v464_v19, %s1427_s16  ;;  %470 = vrot.lane.b32.xlu1 %v465_v20, %s1427_s16  ;;  %479 = vst [vmem:[#allocation1] ss:$2 sm:$0xff] %v1508_v0 }
  0x68   : > { %v480_v21 = vld.sshfl [vmem:[#allocation1] sm:$0xff pattern:$0x75316420]  ;;  %v481_v22 = vld.sshfl [vmem:[#allocation1 + $0x8] sm:$0xff pattern:$0x75316420] }
  0x69   : > { %484 = vrot.lane.b32.xlu0 %v480_v21, %s1428_s17  ;;  %486 = vrot.lane.b32.xlu1 %v481_v22, %s1428_s17  ;;  %495 = vst [vmem:[#allocation1] ss:$2 sm:$0xff] %v1508_v0 }
  0x70   : > { %v497_v23 = vld.sshfl [vmem:[#allocation1 + $0x8] sm:$0xff pattern:$0x75316420]  ;;  %v496_v24 = vld.sshfl [vmem:[#allocation1] sm:$0xff pattern:$0x75316420] }
  0x71   : > { %502 = vrot.lane.b32.xlu0 %v497_v23, %s1429_s18  ;;  %520 = vst [vmem:[#allocation1] ss:$2 sm:$0xff] %v1508_v0  ;;  %500 = vrot.lane.b32.xlu2 %v496_v24, %s1429_s18 }
  0x78   : > { %v522_v25 = vld.sshfl [vmem:[#allocation1 + $0x8] sm:$0xff pattern:$0x75316420]  ;;  %v521_v26 = vld.sshfl [vmem:[#allocation1] sm:$0xff pattern:$0x75316420] }
  0x79   : > { %527 = vrot.lane.b32.xlu1 %v522_v25, %s1430_s19  ;;  %536 = vst [vmem:[#allocation1] ss:$2 sm:$0xff] %v1508_v0  ;;  %525 = vrot.lane.b32.xlu0 %v521_v26, %s1430_s19 }
  0x80   : > { %v537_v27 = vld.sshfl [vmem:[#allocation1] sm:$0xff pattern:$0x75316420]  ;;  %v538_v28 = vld.sshfl [vmem:[#allocation1 + $0x8] sm:$0xff pattern:$0x75316420] }
  0x81   : > { %541 = vrot.lane.b32.xlu1 %v537_v27, %s1431_s20  ;;  %552 = vst [vmem:[#allocation1] ss:$2 sm:$0xff] %v1508_v0  ;;  %543 = vrot.lane.b32.xlu2 %v538_v28, %s1431_s20 }
  0x88   : > { %v553_v29 = vld.sshfl [vmem:[#allocation1] sm:$0xff pattern:$0x75316420]  ;;  %v554_v30 = vld.sshfl [vmem:[#allocation1 + $0x8] sm:$0xff pattern:$0x75316420] }
  0x89   : > { %568 = vst [vmem:[#allocation1] ss:$2 sm:$0xff] %v1508_v0  ;;  %559 = vrot.lane.b32.xlu0 %v554_v30, %s1432_s21  ;;  %557 = vrot.lane.b32.xlu2 %v553_v29, %s1432_s21 }
  0x90   : > { %v569_v31 = vld.sshfl [vmem:[#allocation1] sm:$0xff pattern:$0x75316420]  ;;  %v570_v32 = vld.sshfl [vmem:[#allocation1 + $0x8] sm:$0xff pattern:$0x75316420] }
  0x91   : > { %584 = vst [vmem:[#allocation1] ss:$2 sm:$0xff] %v1508_v0  ;;  %575 = vrot.lane.b32.xlu0 %v570_v32, %s1433_s22  ;;  %573 = vrot.lane.b32.xlu2 %v569_v31, %s1433_s22 }
  0x98   : > { %v585_v33 = vld.sshfl [vmem:[#allocation1] sm:$0xff pattern:$0x75316420]  ;;  %v586_v34 = vld.sshfl [vmem:[#allocation1 + $0x8] sm:$0xff pattern:$0x75316420] }
  0x99   : > { %589 = vrot.lane.b32.xlu1 %v585_v33, %s2485_s23  ;;  %600 = vst [vmem:[#allocation1] ss:$2 sm:$0xff] %v1508_v0  ;;  %591 = vrot.lane.b32.xlu2 %v586_v34, %s2485_s23  ;;  %s1441_s23 = smov 95  }
  0x9b   : > { %v405_v41 = vpop.permute.xlu2 %404 }
  0xa0   : > { %v601_v35 = vld.sshfl [vmem:[#allocation1] sm:$0xff pattern:$0x75316420]  ;;  %v602_v36 = vld.sshfl [vmem:[#allocation1 + $0x8] sm:$0xff pattern:$0x75316420] }
  0xa1   : > { %605 = vrot.lane.b32.xlu1 %v601_v35, %s1435_s24  ;;  %616 = vst [vmem:[#allocation1] ss:$2 sm:$0xff] %v1508_v0  ;;  %607 = vrot.lane.b32.xlu2 %v602_v36, %s1435_s24  ;;  %v2501_v35 = vperm.slane %v1633_v16, 1  ;;  %v2499_v36 = vperm.slane %v1638_v17, 1 }
  0xa3   : > { %v1589_v50 = vpop.permute.xlu2 %420 }
  0xa8   : > { %v618_v37 = vld.sshfl [vmem:[#allocation1 + $0x8] sm:$0xff pattern:$0x75316420]  ;;  %v617_v38 = vld.sshfl [vmem:[#allocation1] sm:$0xff pattern:$0x75316420] }
  0xa9   : > { %623 = vrot.lane.b32.xlu1 %v618_v37, %s1436_s25  ;;  %621 = vrot.lane.b32.xlu0 %v617_v38, %s1436_s25  ;;  %632 = vst [vmem:[#allocation1] ss:$2 sm:$0xff] %v1508_v0 }
  0xab   : > { %v389_v43 = vpop.permute.xlu0 %388  ;;  %v391_v45 = vpop.permute.xlu1 %390 }
  0xac   : > { %v393_v46 = vsel %vm2508_vm0, %v389_v43, %v391_v45  ;;  %v394_v47 = vsel %vm2508_vm0, %v391_v45, %v389_v43  ;;  %v439_v58 = vpop.permute.xlu2 %438  ;;  %vm657_vm0 = vcmp.lt.s32.totalorder %v1580_v44, 97 }
  0xad   : > { %v397_v19 = vmul.f32 %v2498_v9, %v394_v47  ;;  %v398_v20 = vmul.f32 %v2497_v10, %v393_v46 }
  0xb0   : > { %v634_v39 = vld.sshfl [vmem:[#allocation1 + $0x8] sm:$0xff pattern:$0x75316420]  ;;  %v633_v40 = vld.sshfl [vmem:[#allocation1] sm:$0xff pattern:$0x75316420] }
  0xb1   : > { %639 = vrot.lane.b32.xlu1 %v634_v39, %s1437_s26  ;;  %648 = vst [vmem:[#allocation1] ss:$2 sm:$0xff] %v1508_v0  ;;  %637 = vrot.lane.b32.xlu0 %v633_v40, %s1437_s26  ;;  %v1678_v40 = vperm.slane %v1633_v16, 0 }
  0xb3   : > { %v407_v51 = vpop.permute.xlu0 %406 }
  0xb4   : > { %v409_v52 = vsel %vm2506_vm1, %v405_v41, %v407_v51  ;;  %v410_v53 = vsel %vm2506_vm1, %v407_v51, %v405_v41  ;;  %v455_v24 = vpop.permute.xlu2 %454  ;;  %vm641_vm1 = vcmp.lt.s32.totalorder %v1580_v44, 98 }
  0xb5   : > { %v413_v11 = vmul.f32 %v2496_v60, %v410_v53  ;;  %v414_v12 = vmul.f32 %v2495_v61, %v409_v52 }
  0xb7   : > { %v726_v21 = vrot.slane %v413_v11, 4  ;;  %v727_v22 = vrot.slane %v414_v12, 4 }
  0xb8   : > { %v649_v48 = vld.sshfl [vmem:[#allocation1] sm:$0xff pattern:$0x75316420]  ;;  %v650_v49 = vld.sshfl [vmem:[#allocation1 + $0x8] sm:$0xff pattern:$0x75316420] }
  0xb9   : > { %653 = vrot.lane.b32.xlu1 %v649_v48, %s1438_s30  ;;  %664 = vst [vmem:[#allocation1] ss:$2 sm:$0xff] %v1508_v0  ;;  %v1661_v30 = vsel %vm516_vm4, %v397_v19, %v726_v21  ;;  %v1664_v31 = vsel %vm516_vm4, %v398_v20, %v727_v22 }
  0xc0   : > { %v666_v56 = vld.sshfl [vmem:[#allocation1 + $0x8] sm:$0xff pattern:$0x75316420]  ;;  %v665_v57 = vld.sshfl [vmem:[#allocation1] sm:$0xff pattern:$0x75316420] }
  0xc1   : > { %655 = vrot.lane.b32.xlu1 %v650_v49, %s1438_s30  ;;  %671 = vrot.lane.b32.xlu0 %v666_v56, %s1439_s11  ;;  %680 = vst [vmem:[#allocation1] ss:$2 sm:$0xff] %v1508_v0  ;;  %v2500_v56 = vperm.slane %v1638_v17, 2 }
  0xc2   : > { %669 = vrot.lane.b32.xlu2 %v665_v57, %s1439_s11  ;;  %v1711_v57 = vperm.slane %v1633_v16, 3 }
  0xc3   : > { %v437_v59 = vpop.permute.xlu1 %436 }
  0xc4   : > { %v1615_v62 = vsel %vm2509_vm2, %v437_v59, %v439_v58  ;;  %v1619_v63 = vsel %vm2509_vm2, %v439_v58, %v437_v59  ;;  %v1714_v58 = vperm.slane %v1638_v17, 3  ;;  %vm673_vm2 = vcmp.lt.s32.totalorder %v1580_v44, 96 }
  0xc6   : > { %2538 = vst [vmem:[#allocation4_spill] sm:$0xff] %v1714_v58 }
  0xc8   : > { %v681_v13 = vld.sshfl [vmem:[#allocation1] sm:$0xff pattern:$0x75316420]  ;;  %v682_v15 = vld.sshfl [vmem:[#allocation1 + $0x8] sm:$0xff pattern:$0x75316420] }
  0xc9   : > { %696 = vst [vmem:[#allocation1] ss:$2 sm:$0xff] %v1508_v0  ;;  %340 = vrot.lane.b32.xlu1 %v1516_v3, %s2489_s29  ;;  %v1646_v3 = vperm.slane %v1638_v17, 4 }
  0xca   : > { %685 = vrot.lane.b32.xlu2 %v681_v13, %s1441_s23 }
  0xcb   : > { %2536 = vst [vmem:[#allocation2_spill] sm:$0xff] %v1646_v3  ;;  %v453_v23 = vpop.permute.xlu1 %452  ;;  %v515_v25 = vrot.slane %v1646_v3, 4  ;;  %v501_v59 = vpop.permute.xlu2 %500 }
  0xcc   : > { %v457_v26 = vsel %vm2533_vm3, %v453_v23, %v455_v24  ;;  %v458_v27 = vsel %vm2533_vm3, %v455_v24, %v453_v23  ;;  %vm360_vm3 = vcmp.lt.s32.totalorder %v1580_v44, 32 }
  0xcd   : > { %v517_v28 = vsel %vm516_vm4, %v1643_v18, %v515_v25  ;;  %v461_v43 = vmul.f32 %v1678_v40, %v458_v27  ;;  %v1747_v27 = vperm.slane %v1638_v17, 5 }
  0xce   : > { %v519_v29 = vmul.f32 %v517_v28, %v1508_v0 }
  0xcf   : > { %2539 = vst [vmem:[#allocation5_spill] sm:$0xff] %v1747_v27 }
  0xd0   : > { %v697_v32 = vld.sshfl [vmem:[#allocation1] sm:$0xff pattern:$0x75316420]  ;;  %v698_v33 = vld.sshfl [vmem:[#allocation1 + $0x8] sm:$0xff pattern:$0x75316420] }
  0xd1   : > { %701 = vrot.lane.b32.xlu0 %v697_v32, %s1442_s14  ;;  %374 = vrot.lane.b32.xlu1 %v1528_v8, %s2491_s12  ;;  %749 = vst [vmem:[#allocation1] ss:$2 sm:$0xff] %v519_v29  ;;  %v1681_v8 = vperm.slane %v1638_v17, 0 }
  0xd2   : > { %687 = vrot.lane.b32.xlu2 %v682_v15, %s1441_s23 }
  0xd3   : > { %v469_v34 = vpop.permute.xlu0 %468  ;;  %v471_v37 = vpop.permute.xlu1 %470  ;;  %2537 = vst [vmem:[#allocation3_spill] sm:$0xff] %v1681_v8  ;;  %v462_v45 = vmul.f32 %v1681_v8, %v457_v26 }
  0xd4   : > { %v473_v38 = vsel %vm2527_vm5, %v469_v34, %v471_v37  ;;  %v474_v39 = vsel %vm2527_vm5, %v471_v37, %v469_v34  ;;  %vm2532_vm5 = vcmp.lt.s32.totalorder %v1580_v44, 17 }
  0xd5   : > { %v477_v41 = vmul.f32 %v2501_v35, %v474_v39  ;;  %v478_v42 = vmul.f32 %v2499_v36, %v473_v38 }
  0xd7   : > { %v738_v46 = vrot.slane %v477_v41, 4  ;;  %v739_v47 = vrot.slane %v478_v42, 4 }
  0xd8   : > { %v750_v39 = vld.sshfl [vmem:[#allocation1] sm:$0xff pattern:$0x75316420]  ;;  %v751_v41 = vld.sshfl [vmem:[#allocation1 + $0x8] sm:$0xff pattern:$0x75316420] }
  0xd9   : > { %703 = vrot.lane.b32.xlu0 %v698_v33, %s1442_s14  ;;  %356 = vrot.lane.b32.xlu1 %v1521_v5, %s2493_s9  ;;  %v1700_v5 = vsel %vm516_vm4, %v461_v43, %v738_v46  ;;  %v1703_v53 = vsel %vm516_vm4, %v462_v45, %v739_v47  ;;  %1287 = vst [vmem:[#allocation1] ss:$2 sm:$0xff] %v1508_v0  ;;  %v2504_v45 = vperm.slane %v1633_v16, 6  ;;  %v2507_v46 = vperm.slane %v1638_v17, 6 }
  0xda   : > { %342 = vrot.lane.b32.xlu2 %v1518_v4, %s2489_s29  ;;  %v2502_v4 = vperm.slane %v1633_v16, 2  ;;  %v2503_v47 = vperm.slane %v1633_v16, 7 }
  0xdb   : > { %v485_v48 = vpop.permute.xlu0 %484  ;;  %v487_v49 = vpop.permute.xlu1 %486 }
  0xdc   : > { %v489_v51 = vsel %vm488_vm6, %v485_v48, %v487_v49  ;;  %v490_v52 = vsel %vm488_vm6, %v487_v49, %v485_v48  ;;  %v544_v34 = vpop.permute.xlu2 %543  ;;  %v2505_v48 = vperm.slane %v1638_v17, 7 }
  0xdd   : > { %v493_v13 = vmul.f32 %v2502_v4, %v490_v52  ;;  %v494_v15 = vmul.f32 %v2500_v56, %v489_v51 }
  0xe1   : > { %422 = vrot.lane.b32.xlu0 %v1537_v14, %s1424_s13 }
  0xe2   : > { %322 = vrot.lane.b32.xlu2 %v1511_v1, %s2487_s10 }
  0xe3   : > { %v503_v11 = vpop.permute.xlu0 %502 }
  0xe4   : > { %v505_v12 = vsel %vm504_vm7, %v501_v59, %v503_v11  ;;  %v506_v14 = vsel %vm504_vm7, %v503_v11, %v501_v59  ;;  %v558_v52 = vpop.permute.xlu2 %557 }
  0xe5   : > { %v509_v19 = vmul.f32 %v1711_v57, %v506_v14  ;;  %v510_v20 = vmul.f32 %v1714_v58, %v505_v12 }
  0xe7   : > { %v744_v21 = vrot.slane %v509_v19, 4  ;;  %v745_v1 = vrot.slane %v510_v20, 4 }
  0xe9   : > { %372 = vrot.lane.b32.xlu0 %v1526_v7, %s2491_s12  ;;  %v1732_v22 = vsel %vm516_vm4, %v493_v13, %v744_v21  ;;  %v1735_v23 = vsel %vm516_vm4, %v494_v15, %v745_v1  ;;  %v1744_v7 = vperm.slane %v1633_v16, 5 }
  0xea   : > { %358 = vrot.lane.b32.xlu2 %v1523_v6, %s2493_s9 }
  0xeb   : > { %v528_v26 = vpop.permute.xlu1 %527  ;;  %v526_v28 = vpop.permute.xlu0 %525 }
  0xec   : > { %v530_v29 = vsel %vm529_vm8, %v526_v28, %v528_v26  ;;  %v531_v6 = vsel %vm529_vm8, %v528_v26, %v526_v28 }
  0xed   : > { %v534_v32 = vmul.f32 %v1744_v7, %v530_v29  ;;  %v535_v33 = vmul.f32 %v1747_v27, %v531_v6  ;;  %v574_v29 = vpop.permute.xlu2 %573 }
  0xef   : > { %v756_v37 = vrot.slane %v534_v32, 4  ;;  %v757_v38 = vrot.slane %v535_v33, 4 }
  0xf1   : > { %324 = vrot.lane.b32.xlu0 %v1513_v2, %s2487_s10  ;;  %v1759_v42 = vsel %vm516_vm4, %v750_v39, %v756_v37  ;;  %v1762_v43 = vsel %vm516_vm4, %v751_v41, %v757_v38 }
  0xf3   : > { %v542_v2 = vpop.permute.xlu1 %541 }
  0xf4   : > { %v546_v49 = vsel %vm545_vm9, %v542_v2, %v544_v34  ;;  %v547_v51 = vsel %vm545_vm9, %v544_v34, %v542_v2 }
  0xf5   : > { %v550_v12 = vmul.f32 %v2504_v45, %v546_v49  ;;  %v551_v14 = vmul.f32 %v2507_v46, %v547_v51  ;;  %v592_v32 = vpop.permute.xlu2 %591 }
  0xfb   : > { %v560_v59 = vpop.permute.xlu0 %559 }
  0xfc   : > { %v562_v0 = vsel %vm561_vm10, %v558_v52, %v560_v59  ;;  %v563_v11 = vsel %vm561_vm10, %v560_v59, %v558_v52  ;;  %v1803_v59 = vperm.slane %v1599_v54, 7 }
  0xfd   : > { %v566_v13 = vmul.f32 %v2503_v47, %v562_v0  ;;  %v567_v15 = vmul.f32 %v2505_v48, %v563_v11  ;;  %v608_v37 = vpop.permute.xlu2 %607  ;;  %v1806_v0 = vperm.slane %v1604_v55, 7  ;;  %v1811_v11 = vld [vmem:[%s2470_s1 + $0x20] sm:$0xff] }
  0xfe   : > { %2540 = vst [vmem:[#allocation6_spill] sm:$0xff] %v1803_v59  ;;  %v1834_v61 = vperm.slane %v1811_v11, 0  ;;  %v2510_v56 = vperm.slane %v1811_v11, 3  ;;  %v2545_v26 = vperm.slane %v1811_v11, 7 }
  0xff   : > { %v762_v19 = vrot.slane %v566_v13, 4  ;;  %v763_v20 = vrot.slane %v567_v15, 4  ;;  %2541 = vst [vmem:[#allocation7_spill] sm:$0xff] %v1806_v0  ;;  %v1822_v13 = vmul.f32 %v1803_v59, %v1619_v63  ;;  %v1825_v15 = vperm.slane %v1811_v11, 1 }
 0x100   : > { %2542 = vst [vmem:[#allocation8_spill] sm:$0xff] %v1834_v61 }
 0x101   : > { %v1787_v21 = vsel %vm516_vm4, %v550_v12, %v762_v19  ;;  %v1790_v1 = vsel %vm516_vm4, %v551_v14, %v763_v20  ;;  %v1817_v14 = vld [vmem:[%s2470_s1 + $0x28] sm:$0xff]  ;;  %v1829_v19 = vmul.f32 %v1806_v0, %v1615_v62  ;;  %v1848_v62 = vperm.slane %v1811_v11, 2 }
 0x102   : > { %v1837_v60 = vperm.slane %v1817_v14, 0  ;;  %v1840_v10 = vperm.slane %v1817_v14, 1  ;;  %v1851_v36 = vperm.slane %v1817_v14, 2 }
 0x103   : > { %v576_v34 = vpop.permute.xlu0 %575 }
 0x104   : > { %2543 = vst [vmem:[#allocation9_spill] sm:$0xff] %v1837_v60  ;;  %v578_v63 = vsel %vm2513_vm12, %v574_v29, %v576_v34  ;;  %v579_v9 = vsel %vm2513_vm12, %v576_v34, %v574_v29  ;;  %vm705_vm12 = vcmp.lt.s32.totalorder %v1580_v44, 94 }
 0x105   : > { %2544 = vst [vmem:[#allocation10_spill] sm:$0xff] %v1840_v10  ;;  %v1863_v45 = vmul.f32 %v1834_v61, %v578_v63  ;;  %v1866_v48 = vmul.f32 %v1837_v60, %v579_v9 }
 0x10b   : > { %v590_v6 = vpop.permute.xlu1 %589 }
 0x10c   : > { %v594_v20 = vsel %vm2526_vm11, %v590_v6, %v592_v32  ;;  %v595_v4 = vsel %vm2526_vm11, %v592_v32, %v590_v6  ;;  %vm839_vm11 = vcmask 1041408  }
 0x10d   : > { %v1858_v47 = vmul.f32 %v1825_v15, %v594_v20  ;;  %v1876_v63 = vmul.f32 %v1840_v10, %v595_v4 }
 0x10f   : > { %v785_v29 = vrot.slane %v1876_v63, 4  ;;  %v1926_v63 = vld [vmem:[%s2470_s1 + $0x30] ss:$0 sm:$0xff] }
 0x113   : > { %v606_v33 = vpop.permute.xlu1 %605 }
 0x114   : > { %v610_v46 = vsel %vm609_vm13, %v606_v33, %v608_v37 }
 0x11b   : > { %v624_v38 = vpop.permute.xlu1 %623  ;;  %v622_v39 = vpop.permute.xlu0 %621 }
 0x11c   : > { %v1796_v41 = vpop.permute.xlu2 %669  ;;  %v626_v6 = vsel %vm625_vm14, %v622_v39, %v624_v38 }
 0x11d   : > { %v1890_v4 = vmul.f32 %v2510_v56, %v626_v6  ;;  %v2546_v6 = vperm.slane %v1817_v14, 7 }
 0x123   : > { %v1798_v2 = vpop.permute.xlu1 %639  ;;  %v1800_v49 = vpop.permute.xlu0 %637 }
 0x124   : > { %v686_v51 = vpop.permute.xlu2 %685 }
 0x12b   : > { %v654_v52 = vpop.permute.xlu1 %653 }
 0x12c   : > { %v688_v35 = vpop.permute.xlu2 %687 }
 0x12d   : > { %v690_v24 = vsel %vm689_vm15, %v686_v51, %v688_v35  ;;  %v691_v28 = vsel %vm689_vm15, %v688_v35, %v686_v51  ;;  %v611_v35 = vsel %vm609_vm13, %v608_v37, %v606_v33  ;;  %v627_v51 = vsel %vm625_vm14, %v624_v38, %v622_v39 }
 0x12e   : > { %v694_v20 = vmul.f32 %v2545_v26, %v690_v24  ;;  %v695_v56 = vmul.f32 %v2546_v6, %v691_v28  ;;  %v2547_v33 = vperm.slane %v1811_v11, 5  ;;  %v2548_v38 = vperm.slane %v1817_v14, 5 }
 0x12f   : > { %v615_v6 = vmul.f32 %v1851_v36, %v611_v35  ;;  %v2550_v35 = vperm.slane %v1811_v11, 6 }
 0x130   : > { %v802_v0 = vrot.slane %v694_v20, 4  ;;  %v803_v59 = vrot.slane %v695_v56, 4  ;;  %v829_v56 = vld [vmem:[%s2472_s3] sm:$0xff]  ;;  %v2552_v20 = vperm.slane %v1811_v11, 4 }
 0x133   : > { %v672_v12 = vpop.permute.xlu0 %671  ;;  %v656_v34 = vpop.permute.xlu1 %655 }
 0x134   : > { %v658_v9 = vsel %vm657_vm0, %v654_v52, %v656_v34  ;;  %v659_v32 = vsel %vm657_vm0, %v656_v34, %v654_v52  ;;  %v1909_v34 = vpop.permute.xlu2 %342  ;;  %v674_v24 = vsel %vm673_vm2, %v1796_v41, %v672_v12  ;;  %v675_v26 = vsel %vm673_vm2, %v672_v12, %v1796_v41 }
 0x135   : > { %v662_v37 = vmul.f32 %v2547_v33, %v658_v9  ;;  %v663_v39 = vmul.f32 %v2548_v38, %v659_v32  ;;  %v1931_v9 = vld [vmem:[%s2470_s1 + $0x38] ss:$0 sm:$0xff]  ;;  %v614_v32 = vmul.f32 %v1848_v62, %v610_v46  ;;  %v2549_v33 = vperm.slane %v1817_v14, 3 }
 0x136   : > { %v790_v41 = vrot.slane %v1890_v4, 4  ;;  %v642_v12 = vsel %vm641_vm1, %v1800_v49, %v1798_v2  ;;  %v643_v52 = vsel %vm641_vm1, %v1798_v2, %v1800_v49  ;;  %v678_v8 = vmul.f32 %v2550_v35, %v674_v24 }
 0x137   : > { %v631_v38 = vmul.f32 %v2549_v33, %v627_v51  ;;  %v2551_v51 = vperm.slane %v1817_v14, 6  ;;  %v796_v3 = vrot.slane %v662_v37, 4  ;;  %v797_v27 = vrot.slane %v663_v39, 4 }
 0x138   : > { %v646_v24 = vmul.f32 %v2552_v20, %v642_v12  ;;  %v1446_v37 = vmov 0   ;;  %v1968_v39 = vperm.slane %v1604_v55, 6  ;;  %v732_v20 = vrot.slane %v1822_v13, 4 }
 0x139   : > { %v679_v33 = vmul.f32 %v2551_v51, %v675_v26  ;;  %v791_v49 = vrot.slane %v631_v38, 4  ;;  %v2553_v26 = vperm.slane %v1817_v14, 4  ;;  %1409 = vset.pattern.permute.xlu0 %v1446_v37  ;;  %1410 = vset.pattern.permute.xlu2 %v1446_v37  ;;  %v812_v38 = vsel %vm516_vm4, %v678_v8, %v802_v0 }
 0x13a   : > { %832 = vperm.xlu0 %1409, %v829_v56   ;;  %1411 = vset.pattern.permute.xlu1 %v1446_v37  ;;  %v2554_v8 = vrot.slane %v1858_v47, 4  ;;  %v807_v0 = vsel %vm516_vm4, %v1866_v48, %v785_v29  ;;  %v808_v56 = vsel %vm516_vm4, %v614_v32, %v790_v41  ;;  %v379_v32 = vperm.slane %v1599_v54, 3 }
 0x13b   : > { %v1921_v28 = vpop.permute.xlu1 %340  ;;  %v647_v35 = vmul.f32 %v2553_v26, %v643_v52  ;;  %v813_v12 = vsel %vm516_vm4, %v679_v33, %v803_v59  ;;  %v733_v26 = vrot.slane %v1829_v19, 4 }
 0x13c   : > { %v806_v59 = vsel %vm516_vm4, %v1863_v45, %v2554_v8  ;;  %v809_v45 = vsel %vm516_vm4, %v615_v6, %v791_v49  ;;  %v380_v6 = vperm.slane %v1604_v55, 3  ;;  %v347_v49 = vperm.slane %v1599_v54, 1 }
 0x13d   : > { %v2558_v8 = vpack.c.bf16 %v1735_v23, %v1703_v53 }
 0x143   : > { %v702_v25 = vpop.permute.xlu0 %701  ;;  %v375_v10 = vpop.permute.xlu1 %374 }
 0x14b   : > { %v704_v46 = vpop.permute.xlu0 %703  ;;  %v357_v37 = vpop.permute.xlu1 %356 }
 0x14c   : > { %v706_v4 = vsel %vm705_vm12, %v702_v25, %v704_v46  ;;  %v707_v58 = vsel %vm705_vm12, %v704_v46, %v702_v25  ;;  %v810_v46 = vsel %vm516_vm4, %v646_v24, %v796_v3  ;;  %v822_v24 = vpack.c.bf16 %v808_v56, %v806_v59 }
 0x14d   : > { %v710_v60 = vmul.f32 %v1926_v63, %v706_v4  ;;  %v711_v2 = vmul.f32 %v1931_v9, %v707_v58  ;;  %v1965_v58 = vperm.slane %v1599_v54, 6  ;;  %v811_v4 = vsel %vm516_vm4, %v647_v35, %v797_v27 }
 0x14e   : > { %v824_v13 = vpack.c.bf16 %v812_v38, %v810_v46  ;;  %v825_v19 = vpack.c.bf16 %v813_v12, %v811_v4  ;;  %v823_v35 = vpack.c.bf16 %v809_v45, %v807_v0  ;;  %v363_v4 = vperm.slane %v1599_v54, 2 }
 0x14f   : > { %v826_v51 = vpack.c.bf16 %v710_v60, %v710_v60  ;;  %v827_v25 = vpack.c.bf16 %v711_v2, %v711_v2  ;;  %v323_v2 = vpop.permute.xlu2 %322 }
 0x151   : > { %v841_v52 = vsel %vm839_vm11, %v826_v51, 0  ;;  %v844_v60 = vsel %vm839_vm11, %v827_v25, 0  ;;  %vm376_vm11 = vcmp.lt.s32.totalorder %v1580_v44, 31 }
 0x152   : > { %847 = vmatpush.bf16.msra.mxu0 %v841_v52  ;;  %860 = vmatpush.bf16.msra.mxu1 %v844_v60  ;;  %v2555_v52 = vpack.c.bf16 %v1787_v21, %v1759_v42 }
 0x153   : > { %v423_v61 = vpop.permute.xlu0 %422 }
 0x154   : > { %v425_v3 = vsel %vm2532_vm5, %v1589_v50, %v423_v61  ;;  %v426_v27 = vsel %vm2532_vm5, %v423_v61, %v1589_v50  ;;  %vm2534_vm5 = vcmp.lt.s32.totalorder %v1580_v44, 33 }
 0x155   : > { %v429_v33 = vmul.f32 %v1965_v58, %v426_v27  ;;  %v430_v47 = vmul.f32 %v1968_v39, %v425_v3  ;;  %v346_v25 = vsel %vm2534_vm5, %v1909_v34, %v1921_v28  ;;  %v345_v12 = vsel %vm2534_vm5, %v1921_v28, %v1909_v34 }
 0x156   : > { %848 = vmatpush.bf16.msra.mxu0 %v824_v13  ;;  %861 = vmatpush.bf16.msra.mxu1 %v825_v19  ;;  %v349_v34 = vmul.f32 %v347_v49, %v346_v25  ;;  %vm2535_vm5 = vcmp.lt.s32.totalorder %v1580_v44, 34  ;;  %v332_v28 = vperm.slane %v1604_v55, 0 }
 0x157   : > { %v772_v48 = vsel %vm516_vm4, %v429_v33, %v732_v20  ;;  %v773_v29 = vsel %vm516_vm4, %v430_v47, %v733_v26  ;;  %v359_v38 = vpop.permute.xlu2 %358  ;;  %v364_v20 = vperm.slane %v1604_v55, 2  ;;  %v2557_v26 = vpack.c.bf16 %v1732_v22, %v1700_v5 }
 0x158   : > { %v816_v50 = vpack.c.bf16 %v772_v48, %v1661_v30  ;;  %v817_v61 = vpack.c.bf16 %v773_v29, %v1664_v31  ;;  %v348_v31 = vperm.slane %v1604_v55, 1  ;;  %v361_v42 = vsel %vm360_vm3, %v357_v37, %v359_v38 }
 0x159   : > { %v366_v27 = vmul.f32 %v364_v20, %v361_v42  ;;  %v714_v22 = vrot.slane %v349_v34, 4 }
 0x15a   : > { %849 = vmatpush.bf16.msra.mxu0 %v822_v24  ;;  %862 = vmatpush.bf16.msra.mxu1 %v823_v35  ;;  %v350_v21 = vmul.f32 %v348_v31, %v345_v12  ;;  %v828_v24 = vld [vmem:[%s2471_s2] sm:$0xf] }
 0x15b   : > { %v373_v41 = vpop.permute.xlu0 %372 }
 0x15c   : > { %v377_v51 = vsel %vm376_vm11, %v373_v41, %v375_v10  ;;  %v378_v30 = vsel %vm376_vm11, %v375_v10, %v373_v41  ;;  %v2556_v10 = vpack.c.bf16 %v1790_v1, %v1762_v43  ;;  %v362_v43 = vsel %vm360_vm3, %v359_v38, %v357_v37 }
 0x15d   : > { %v381_v60 = vmul.f32 %v379_v32, %v378_v30  ;;  %v382_v46 = vmul.f32 %v380_v6, %v377_v51  ;;  %v331_v1 = vperm.slane %v1599_v54, 0  ;;  %v365_v3 = vmul.f32 %v363_v4, %v362_v43 }
 0x15e   : > { %850 = vmatpush.bf16.msra.mxu0 %v2555_v52  ;;  %863 = vmatpush.bf16.msra.mxu1 %v2556_v10  ;;  %v715_v33 = vrot.slane %v350_v21, 4 }
 0x15f   : > { %v720_v59 = vrot.slane %v381_v60, 4  ;;  %v721_v0 = vrot.slane %v382_v46, 4 }
 0x161   : > { %v768_v56 = vsel %vm516_vm4, %v365_v3, %v720_v59  ;;  %v769_v48 = vsel %vm516_vm4, %v366_v27, %v721_v0 }
 0x162   : > { %851 = vmatpush.bf16.msra.mxu0 %v2557_v26  ;;  %864 = vmatpush.bf16.msra.mxu1 %v2558_v8 }
 0x163   : > { %v325_v13 = vpop.permute.xlu0 %324 }
 0x164   : > { %v329_v19 = vsel %vm2535_vm5, %v323_v2, %v325_v13  ;;  %v330_v5 = vsel %vm2535_vm5, %v325_v13, %v323_v2  ;;  %vm835_vm5 = vcmask 818176  }
 0x165   : > { %v333_v53 = vmul.f32 %v331_v1, %v330_v5  ;;  %v334_v23 = vmul.f32 %v332_v28, %v329_v19 }
 0x166   : > { %852 = vmatpush.bf16.msra.mxu0 %v816_v50  ;;  %865 = vmatpush.bf16.msra.mxu1 %v817_v61 }
 0x167   : > { %v766_v47 = vsel %vm516_vm4, %v333_v53, %v714_v22  ;;  %v767_v45 = vsel %vm516_vm4, %v334_v23, %v715_v33  ;;  %v2567_v23 = vperm.slane %v1638_v17, 6 }
 0x168   : > { %v814_v29 = vpack.c.bf16 %v768_v56, %v766_v47  ;;  %v815_v2 = vpack.c.bf16 %v769_v48, %v767_v45  ;;  %v2568_v56 = vperm.slane %v1638_v17, 7  ;;  %v2569_v48 = vperm.slane %v1633_v16, 6 }
 0x16a   : > { %853 = vmatpush.bf16.msra.mxu0 %v814_v29  ;;  %866 = vmatpush.bf16.msra.mxu1 %v815_v2  ;;  %v2570_v2 = vperm.slane %v1633_v16, 7 }
 0x16d   : > { %1366 = vmatmul.msk.bf16.vlgmr.msra.gmra.mxu0 %vm835_vm5, %v828_v24  ;;  %1367 = vmatmul.msk.bf16.vlgmr.msra.gmra.mxu1 %vm835_vm5, %v828_v24 }
 0x1ac   : > { %v833_v35 = vpop.permute.xlu0 %832 }
 0x1ea   : > { %v855_v50 = vpop.f32.mrf.mxu0  ;;  %v868_v61 = vpop.f32.mrf.mxu1 }
 0x1eb   : > { %v856_v41 = vadd.f32 %v855_v50, %v833_v35  ;;  %v869_v51 = vadd.f32 %v868_v61, %v833_v35 }
 0x1ed   : > { %v2063_v30 = vmax.f32 %v856_v41, 0.0  ;;  %v2065_v25 = vmax.f32 %v869_v51, 0.0 }
 0x1ef   : > { %1062 = vrot.lane.b32.xlu2 %v2065_v25, %s1442_s14  ;;  %988 = vrot.lane.b32.xlu0 %v2063_v30, %s1432_s21 }
 0x1f0   : > { %1060 = vrot.lane.b32.xlu1 %v2063_v30, %s1442_s14 }
 0x1f2   : > { %v857_v37 = vpop.f32.mrf.mxu0  ;;  %v870_v38 = vpop.f32.mrf.mxu1 }
 0x1f7   : > { %982 = vrot.lane.b32.xlu2 %v2065_v25, %s1431_s20  ;;  %1046 = vrot.lane.b32.xlu0 %v2065_v25, %s1439_s11 }
 0x1f8   : > { %980 = vrot.lane.b32.xlu1 %v2063_v30, %s1431_s20  ;;  %s2561_s20 = smov 30  }
 0x1ff   : > { %1044 = vrot.lane.b32.xlu2 %v2063_v30, %s1439_s11  ;;  %972 = vrot.lane.b32.xlu0 %v2063_v30, %s1430_s19  ;;  %s2559_s11 = smov 112  }
 0x200   : > { %990 = vrot.lane.b32.xlu1 %v2065_v25, %s1432_s21  ;;  %s2563_s21 = smov 18  }
 0x207   : > { %1054 = vrot.lane.b32.xlu2 %v2065_v25, %s1441_s23  ;;  %1030 = vrot.lane.b32.xlu0 %v2065_v25, %s1437_s26 }
 0x208   : > { %1052 = vrot.lane.b32.xlu1 %v2063_v30, %s1441_s23  ;;  %s2564_s23 = smov 31  }
 0x20f   : > { %1028 = vrot.lane.b32.xlu2 %v2063_v30, %s1437_s26  ;;  %954 = vrot.lane.b32.xlu0 %v2063_v30, %s1428_s17  ;;  %s2566_s26 = smov 34  }
 0x210   : > { %974 = vrot.lane.b32.xlu1 %v2065_v25, %s1430_s19 }
 0x217   : > { %1038 = vrot.lane.b32.xlu2 %v2065_v25, %s1438_s30  ;;  %964 = vrot.lane.b32.xlu0 %v2065_v25, %s1429_s18 }
 0x218   : > { %1036 = vrot.lane.b32.xlu1 %v2063_v30, %s1438_s30 }
 0x21f   : > { %962 = vrot.lane.b32.xlu2 %v2063_v30, %s1429_s18  ;;  %1020 = vrot.lane.b32.xlu0 %v2063_v30, %s1436_s25 }
 0x220   : > { %956 = vrot.lane.b32.xlu1 %v2065_v25, %s1428_s17  ;;  %s2560_s17 = smov 16  }
 0x227   : > { %1014 = vrot.lane.b32.xlu2 %v2065_v25, %s1435_s24  ;;  %940 = vrot.lane.b32.xlu0 %v2065_v25, %s1426_s15 }
 0x228   : > { %1012 = vrot.lane.b32.xlu1 %v2063_v30, %s1435_s24 }
 0x22f   : > { %938 = vrot.lane.b32.xlu2 %v2063_v30, %s1426_s15  ;;  %996 = vrot.lane.b32.xlu0 %v2063_v30, %s1433_s22 }
 0x230   : > { %1022 = vrot.lane.b32.xlu1 %v2065_v25, %s1436_s25  ;;  %s2565_s25 = smov 33  }
 0x237   : > { %948 = vrot.lane.b32.xlu2 %v2065_v25, %s1427_s16  ;;  %1006 = vrot.lane.b32.xlu0 %v2065_v25, %s2559_s11 }
 0x238   : > { %946 = vrot.lane.b32.xlu1 %v2063_v30, %s1427_s16  ;;  %s2562_s16 = smov 32  }
 0x23f   : > { %1004 = vrot.lane.b32.xlu2 %v2063_v30, %s2559_s11  ;;  %930 = vrot.lane.b32.xlu0 %v2063_v30, %s2560_s17 }
 0x240   : > { %998 = vrot.lane.b32.xlu1 %v2065_v25, %s1433_s22 }
 0x247   : > { %924 = vrot.lane.b32.xlu2 %v2065_v25, %s1424_s13  ;;  %908 = vrot.lane.b32.xlu0 %v2065_v25, %s2561_s20 }
 0x248   : > { %922 = vrot.lane.b32.xlu1 %v2063_v30, %s1424_s13 }
 0x249   : > { %v1063_v12 = vpop.permute.xlu2 %1062 }
 0x24f   : > { %906 = vrot.lane.b32.xlu2 %v2063_v30, %s2561_s20  ;;  %890 = vrot.lane.b32.xlu0 %v2063_v30, %s2562_s16 }
 0x250   : > { %932 = vrot.lane.b32.xlu1 %v2065_v25, %s2560_s17 }
 0x251   : > { %v983_v52 = vpop.permute.xlu2 %982 }
 0x257   : > { %916 = vrot.lane.b32.xlu2 %v2065_v25, %s2563_s21  ;;  %900 = vrot.lane.b32.xlu0 %v2065_v25, %s2564_s23 }
 0x258   : > { %914 = vrot.lane.b32.xlu1 %v2063_v30, %s2563_s21 }
 0x259   : > { %v1045_v10 = vpop.permute.xlu2 %1044 }
 0x25f   : > { %898 = vrot.lane.b32.xlu2 %v2063_v30, %s2564_s23  ;;  %882 = vrot.lane.b32.xlu0 %v2063_v30, %s2565_s25 }
 0x260   : > { %892 = vrot.lane.b32.xlu1 %v2065_v25, %s2562_s16 }
 0x261   : > { %v989_v60 = vpop.permute.xlu0 %988  ;;  %v1055_v46 = vpop.permute.xlu2 %1054 }
 0x262   : > { %v1061_v34 = vpop.permute.xlu1 %1060 }
 0x263   : > { %v1064_v42 = vsel %vm705_vm12, %v1061_v34, %v1063_v12  ;;  %v1065_v43 = vsel %vm705_vm12, %v1063_v12, %v1061_v34  ;;  %vm1107_vm12 = vcmask 588800  }
 0x264   : > { %v1067_v21 = vmul.f32 %v1931_v9, %v1065_v43  ;;  %v1066_v26 = vmul.f32 %v1926_v63, %v1064_v42  ;;  %v2572_v42 = vperm.slane %v1817_v14, 6 }
 0x266   : > { %v1092_v8 = vpack.c.bf16 %v1066_v26, %v1066_v26  ;;  %v1093_v59 = vpack.c.bf16 %v1067_v21, %v1067_v21  ;;  %v2573_v21 = vperm.slane %v1811_v11, 7 }
 0x267   : > { %876 = vrot.lane.b32.xlu2 %v2065_v25, %s2566_s26 }
 0x268   : > { %874 = vrot.lane.b32.xlu1 %v2063_v30, %s2566_s26  ;;  %v1112_v0 = vsel %vm516_vm4, %v1092_v8, 0  ;;  %v1115_v3 = vsel %vm516_vm4, %v1093_v59, 0  ;;  %v2574_v8 = vperm.slane %v1817_v14, 7 }
 0x269   : > { %1133 = vmatpush.bf16.msra.mxu3 %v1112_v0  ;;  %1159 = vmatpush.bf16.msrb.mxu0 %v1115_v3  ;;  %v1047_v27 = vpop.permute.xlu0 %1046  ;;  %v1029_v63 = vpop.permute.xlu2 %1028 }
 0x26a   : > { %v981_v13 = vpop.permute.xlu1 %980  ;;  %v1048_v41 = vsel %vm673_vm2, %v1045_v10, %v1047_v27  ;;  %v1049_v51 = vsel %vm673_vm2, %v1047_v27, %v1045_v10  ;;  %vm2585_vm2 = vcmp.lt.s32.totalorder %v1580_v44, 112 }
 0x26b   : > { %v985_v9 = vsel %vm545_vm9, %v983_v52, %v981_v13  ;;  %v984_v19 = vsel %vm545_vm9, %v981_v13, %v983_v52  ;;  %v1051_v43 = vmul.f32 %v1049_v51, %v2572_v42  ;;  %v2577_v51 = vperm.slane %v1811_v11, 5  ;;  %vm2586_vm5 = vmmov %vm2585_vm2 }
 0x26c   : > { %v2183_v47 = vmul.f32 %v985_v9, %v2567_v23  ;;  %v986_v29 = vmul.f32 %v984_v19, %v2569_v48  ;;  %v970_v19 = vmul.f32 %v2063_v30, %v1643_v18  ;;  %v2575_v30 = vperm.slane %v1811_v11, 4 }
 0x26d   : > { %vm2587_vm9 = vcmp.lt.s32.totalorder %v1580_v44, 113 }
 0x270   : > { %884 = vrot.lane.b32.xlu1 %v2065_v25, %s2565_s25 }
 0x271   : > { %v2175_v5 = vpop.permute.xlu0 %972  ;;  %v1039_v35 = vpop.permute.xlu2 %1038 }
 0x272   : > { %v991_v22 = vpop.permute.xlu1 %990 }
 0x273   : > { %v992_v33 = vsel %vm561_vm10, %v989_v60, %v991_v22  ;;  %v993_v53 = vsel %vm561_vm10, %v991_v22, %v989_v60  ;;  %v2571_v60 = vperm.slane %v1811_v11, 6  ;;  %vm2588_vm10 = vmmov %vm2587_vm9 }
 0x274   : > { %v2187_v45 = vmul.f32 %v993_v53, %v2568_v56  ;;  %v994_v24 = vmul.f32 %v992_v33, %v2570_v2 }
 0x275   : > { %v1050_v34 = vmul.f32 %v1048_v41, %v2571_v60 }
 0x276   : > { %v1082_v50 = vpack.c.bf16 %v994_v24, %v986_v29  ;;  %v1083_v61 = vpack.c.bf16 %v2187_v45, %v2183_v47 }
 0x278   : > { %1117 = vmatpush.bf16.msra.mxu2 %v1082_v50  ;;  %v2576_v50 = vperm.slane %v1817_v14, 4 }
 0x279   : > { %v1031_v37 = vpop.permute.xlu0 %1030  ;;  %v2211_v3 = vpop.permute.xlu2 %962 }
 0x27a   : > { %v1053_v38 = vpop.permute.xlu1 %1052  ;;  %v1032_v33 = vsel %vm641_vm1, %v1029_v63, %v1031_v37  ;;  %v1033_v53 = vsel %vm641_vm1, %v1031_v37, %v1029_v63  ;;  %v2578_v63 = vperm.slane %v1817_v14, 5  ;;  %vm2583_vm1 = vcmp.lt.s32.totalorder %v1580_v44, 14 }
 0x27b   : > { %v1056_v12 = vsel %vm689_vm15, %v1053_v38, %v1055_v46  ;;  %v1057_v52 = vsel %vm689_vm15, %v1055_v46, %v1053_v38  ;;  %v1034_v24 = vmul.f32 %v1032_v33, %v2575_v30  ;;  %v1035_v41 = vmul.f32 %v1033_v53, %v2576_v50 }
 0x27c   : > { %v1058_v26 = vmul.f32 %v1056_v12, %v2573_v21  ;;  %v1059_v10 = vmul.f32 %v1057_v52, %v2574_v8  ;;  %v2580_v30 = vperm.slane %v1811_v11, 3  ;;  %v2581_v50 = vperm.slane %v1817_v14, 3 }
 0x27d   : > { %vm2600_vm15 = vcmp.lt.s32.totalorder %v1580_v44, 17 }
 0x27e   : > { %v1090_v59 = vpack.c.bf16 %v1058_v26, %v1050_v34  ;;  %v1091_v0 = vpack.c.bf16 %v1059_v10, %v1051_v43  ;;  %v2579_v26 = vperm.slane %v1633_v16, 2 }
 0x280   : > { %1134 = vmatpush.bf16.msra.mxu3 %v1090_v59  ;;  %1160 = vmatpush.bf16.msrb.mxu0 %v1091_v0 }
 0x281   : > { %v2213_v27 = vpop.permute.xlu0 %954  ;;  %v1015_v56 = vpop.permute.xlu2 %1014 }
 0x282   : > { %v975_v46 = vpop.permute.xlu1 %974 }
 0x283   : > { %v976_v13 = vsel %vm529_vm8, %v2175_v5, %v975_v46 }
 0x284   : > { %v978_v9 = vmul.f32 %v976_v13, %v1744_v7 }
 0x286   : > { %v1080_v22 = vpack.c.bf16 %v978_v9, %v970_v19 }
 0x288   : > { %1118 = vmatpush.bf16.msra.mxu2 %v1080_v22 }
 0x289   : > { %v2225_v23 = vpop.permute.xlu0 %964  ;;  %v2246_v43 = vpop.permute.xlu2 %938 }
 0x28a   : > { %v1037_v48 = vpop.permute.xlu1 %1036 }
 0x28b   : > { %v1040_v29 = vsel %vm657_vm0, %v1037_v48, %v1039_v35  ;;  %v1041_v2 = vsel %vm657_vm0, %v1039_v35, %v1037_v48  ;;  %v967_v35 = vsel %vm504_vm7, %v2225_v23, %v2211_v3  ;;  %vm2582_vm0 = vcmp.lt.s32.totalorder %v1580_v44, 15 }
 0x28c   : > { %v1042_v38 = vmul.f32 %v1040_v29, %v2577_v51  ;;  %v1043_v37 = vmul.f32 %v1041_v2, %v2578_v63  ;;  %v968_v21 = vmul.f32 %v967_v35, %v1711_v57  ;;  %v2584_v35 = vperm.slane %v1633_v16, 1 }
 0x28e   : > { %v1088_v12 = vpack.c.bf16 %v1042_v38, %v1034_v24  ;;  %v1089_v52 = vpack.c.bf16 %v1043_v37, %v1035_v41 }
 0x290   : > { %1135 = vmatpush.bf16.msra.mxu3 %v1088_v12  ;;  %1161 = vmatpush.bf16.msrb.mxu0 %v1089_v52 }
 0x291   : > { %v1021_v60 = vpop.permute.xlu0 %1020  ;;  %v949_v13 = vpop.permute.xlu2 %948 }
 0x292   : > { %v957_v34 = vpop.permute.xlu1 %956 }
 0x293   : > { %v959_v42 = vsel %vm488_vm6, %v957_v34, %v2213_v27 }
 0x294   : > { %v960_v8 = vmul.f32 %v959_v42, %v2579_v26 }
 0x296   : > { %v1078_v10 = vpack.c.bf16 %v968_v21, %v960_v8 }
 0x298   : > { %1119 = vmatpush.bf16.msra.mxu2 %v1078_v10 }
 0x299   : > { %v941_v59 = vpop.permute.xlu0 %940  ;;  %v1005_v38 = vpop.permute.xlu2 %1004 }
 0x29a   : > { %v1013_v0 = vpop.permute.xlu1 %1012  ;;  %v943_v63 = vsel %vm2582_vm0, %v941_v59, %v2246_v43 }
 0x29b   : > { %v1016_v9 = vsel %vm609_vm13, %v1013_v0, %v1015_v56  ;;  %v1017_v19 = vsel %vm609_vm13, %v1015_v56, %v1013_v0  ;;  %v944_v11 = vmul.f32 %v943_v63, %v1678_v40  ;;  %v977_v0 = vsel %vm529_vm8, %v975_v46, %v2175_v5  ;;  %v2291_v5 = vld [vmem:[%s2473_s4] sm:$0xff] }
 0x29c   : > { %v1018_v29 = vmul.f32 %v1016_v9, %v1848_v62  ;;  %v1019_v2 = vmul.f32 %v1017_v19, %v1851_v36  ;;  %v2592_v46 = vld [vmem:[#allocation5_spill] sm:$0xff] }
 0x2a1   : > { %v997_v22 = vpop.permute.xlu0 %996  ;;  %v925_v8 = vpop.permute.xlu2 %924 }
 0x2a2   : > { %v1023_v33 = vpop.permute.xlu1 %1022 }
 0x2a3   : > { %v1024_v53 = vsel %vm625_vm14, %v1021_v60, %v1023_v33  ;;  %v1025_v48 = vsel %vm625_vm14, %v1023_v33, %v1021_v60  ;;  %v2589_v33 = vld [vmem:[#allocation10_spill] sm:$0xff]  ;;  %vm2597_vm14 = vmmov %vm2582_vm0 }
 0x2a4   : > { %v1026_v24 = vmul.f32 %v1024_v53, %v2580_v30  ;;  %v1027_v41 = vmul.f32 %v1025_v48, %v2581_v50  ;;  %v2590_v48 = vld [vmem:[#allocation8_spill] sm:$0xff]  ;;  %vm2601_vm0 = vmmov %vm2600_vm15 }
 0x2a6   : > { %v1086_v51 = vpack.c.bf16 %v1026_v24, %v1018_v29  ;;  %v1087_v56 = vpack.c.bf16 %v1027_v41, %v1019_v2  ;;  %v2591_v2 = vld [vmem:[#allocation9_spill] sm:$0xff]  ;;  %v979_v41 = vmul.f32 %v977_v0, %v2592_v46 }
 0x2a8   : > { %1136 = vmatpush.bf16.msra.mxu3 %v1086_v51  ;;  %1162 = vmatpush.bf16.msrb.mxu0 %v1087_v56  ;;  %v1103_v51 = vunpack.c.h.b16 %v2291_v5  ;;  %v2593_v56 = vld [vmem:[#allocation2_spill] sm:$0xff] }
 0x2a9   : > { %v1007_v37 = vpop.permute.xlu0 %1006  ;;  %v907_v47 = vpop.permute.xlu2 %906 }
 0x2aa   : > { %v947_v12 = vpop.permute.xlu1 %946  ;;  %v1008_v42 = vsel %vm2585_vm2, %v1005_v38, %v1007_v37  ;;  %v1009_v21 = vsel %vm2586_vm5, %v1007_v37, %v1005_v38  ;;  %v971_v38 = vmul.f32 %v2065_v25, %v2593_v56  ;;  %v1105_v63 = vpack.c.b16 %v1103_v51, %v1103_v51  ;;  %v2596_v25 = vld [vmem:[#allocation4_spill] sm:$0xff] }
 0x2ab   : > { %v951_v52 = vsel %vm2583_vm1, %v949_v13, %v947_v12  ;;  %v1010_v19 = vmul.f32 %v1008_v42, %v1825_v15  ;;  %v1011_v53 = vmul.f32 %v1009_v21, %v2589_v33  ;;  %v966_v37 = vsel %vm504_vm7, %v2211_v3, %v2225_v23  ;;  %v2599_v42 = vld [vmem:[#allocation3_spill] sm:$0xff] }
 0x2ac   : > { %v952_v14 = vmul.f32 %v951_v52, %v2584_v35  ;;  %v1081_v35 = vpack.c.bf16 %v979_v41, %v971_v38  ;;  %v942_v3 = vsel %vm2597_vm14, %v2246_v43, %v941_v59  ;;  %v2598_v23 = vperm.slane %v1638_v17, 1 }
 0x2ad   : > { %v945_v21 = vmul.f32 %v942_v3, %v2599_v42  ;;  %vm2606_vm5 = vcmp.lt.s32.totalorder %v1580_v44, 30  ;;  %vm2616_vm14 = vcmp.lt.s32.totalorder %v1580_v44, 33 }
 0x2ae   : > { %v1076_v60 = vpack.c.bf16 %v952_v14, %v944_v11 }
 0x2b0   : > { %1120 = vmatpush.bf16.msra.mxu2 %v1076_v60 }
 0x2b1   : > { %v931_v26 = vpop.permute.xlu0 %930 }
 0x2b2   : > { %v999_v10 = vpop.permute.xlu1 %998 }
 0x2b3   : > { %v1000_v9 = vsel %vm2587_vm9, %v997_v22, %v999_v10  ;;  %v1001_v16 = vsel %vm2588_vm10, %v999_v10, %v997_v22  ;;  %v958_v22 = vsel %vm488_vm6, %v2213_v27, %v957_v34  ;;  %v2594_v27 = vperm.slane %v1638_v17, 2  ;;  %vm2595_vm6 = vmmov %vm2583_vm1 }
 0x2b4   : > { %v1002_v29 = vmul.f32 %v1000_v9, %v2590_v48  ;;  %v1003_v30 = vmul.f32 %v1001_v16, %v2591_v2  ;;  %v950_v45 = vsel %vm2595_vm6, %v947_v12, %v949_v13  ;;  %vm2602_vm1 = vcmp.lt.s32.totalorder %v1580_v44, 16  ;;  %vm2607_vm9 = vmmov %vm2606_vm5 }
 0x2b5   : > { %v961_v34 = vmul.f32 %v958_v22, %v2594_v27  ;;  %v953_v14 = vmul.f32 %v950_v45, %v2598_v23  ;;  %vm2603_vm2 = vmmov %vm2602_vm1  ;;  %vm2608_vm10 = vcmp.lt.s32.totalorder %v1580_v44, 18  ;;  %v2611_v27 = vperm.slane %v1604_v55, 4 }
 0x2b6   : > { %v1084_v24 = vpack.c.bf16 %v1010_v19, %v1002_v29  ;;  %v1085_v50 = vpack.c.bf16 %v1011_v53, %v1003_v30  ;;  %v2604_v19 = vld [vmem:[#allocation6_spill] sm:$0xff]  ;;  %v2605_v29 = vld [vmem:[#allocation7_spill] sm:$0xff]  ;;  %vm2609_vm6 = vmmov %vm2608_vm10 }
 0x2b7   : > { %v1077_v59 = vpack.c.bf16 %v953_v14, %v945_v21 }
 0x2b8   : > { %1137 = vmatpush.bf16.msra.mxu3 %v1084_v24  ;;  %1163 = vmatpush.bf16.msrb.mxu0 %v1085_v50 }
 0x2b9   : > { %v909_v52 = vpop.permute.xlu0 %908 }
 0x2ba   : > { %v923_v11 = vpop.permute.xlu1 %922  ;;  %v910_v41 = vsel %vm2606_vm5, %v907_v47, %v909_v52 }
 0x2bb   : > { %1368 = vmatmul.msk.bf16.vlgmr.msra.gmra.mxu3 %vm1107_vm12, %v1105_v63  ;;  %1369 = vmatmul.msk.bf16.vlgmr.msrb.gmra.mxu0 %vm1107_vm12, %v1105_v63  ;;  %v926_v10 = vsel %vm2600_vm15, %v923_v11, %v925_v8  ;;  %v927_v13 = vsel %vm2601_vm0, %v925_v8, %v923_v11  ;;  %v917_v8 = vpop.permute.xlu2 %916  ;;  %v1095_v63 = vld [vmem:[%s2474_s5] sm:$0xff]  ;;  %vm2617_vm15 = vmmov %vm2616_vm14 }
 0x2bc   : > { %1143 = vmatpush.bf16.msrb.mxu3 %v1083_v61  ;;  %v969_v61 = vmul.f32 %v966_v37, %v2596_v25  ;;  %v928_v17 = vmul.f32 %v927_v13, %v1965_v58  ;;  %v929_v9 = vmul.f32 %v926_v10, %v1968_v39  ;;  %v2610_v37 = vperm.slane %v1599_v54, 4  ;;  %1098 = vperm.xlu2 %1410, %v1095_v63  }
 0x2be   : > { %v1079_v60 = vpack.c.bf16 %v969_v61, %v961_v34  ;;  %v913_v34 = vmul.f32 %v910_v41, %v2611_v27 }
 0x2c0   : > { %1144 = vmatpush.bf16.msrb.mxu3 %v1081_v35 }
 0x2c1   : > { %v891_v16 = vpop.permute.xlu0 %890 }
 0x2c2   : > { %v933_v12 = vpop.permute.xlu1 %932 }
 0x2c3   : > { %v934_v0 = vsel %vm2602_vm1, %v931_v26, %v933_v12  ;;  %v935_v43 = vsel %vm2603_vm2, %v933_v12, %v931_v26  ;;  %v911_v26 = vsel %vm2607_vm9, %v909_v52, %v907_v47  ;;  %v2612_v52 = vperm.slane %v1599_v54, 5  ;;  %v899_v14 = vpop.permute.xlu2 %898 }
 0x2c4   : > { %1145 = vmatpush.bf16.msrb.mxu3 %v1079_v60  ;;  %v936_v53 = vmul.f32 %v935_v43, %v2604_v19  ;;  %v937_v30 = vmul.f32 %v934_v0, %v2605_v29  ;;  %v912_v11 = vmul.f32 %v911_v26, %v2610_v37  ;;  %v2613_v47 = vperm.slane %v1604_v55, 5 }
 0x2c5   : > { %vm2620_vm1 = vcmp.lt.s32.totalorder %v1580_v44, 113 }
 0x2c6   : > { %v1074_v24 = vpack.c.bf16 %v936_v53, %v928_v17  ;;  %v1075_v50 = vpack.c.bf16 %v937_v30, %v929_v9  ;;  %vm2621_vm2 = vmmov %vm2620_vm1 }
 0x2c8   : > { %1146 = vmatpush.bf16.msrb.mxu3 %v1077_v59  ;;  %1121 = vmatpush.bf16.msra.mxu2 %v1074_v24 }
 0x2c9   : > { %v901_v61 = vpop.permute.xlu0 %900 }
 0x2ca   : > { %v915_v51 = vpop.permute.xlu1 %914  ;;  %v902_v60 = vsel %vm376_vm11, %v899_v14, %v901_v61  ;;  %v903_v21 = vsel %vm376_vm11, %v901_v61, %v899_v14 }
 0x2cb   : > { %v918_v22 = vsel %vm2608_vm10, %v915_v51, %v917_v8  ;;  %v919_v38 = vsel %vm2609_vm6, %v917_v8, %v915_v51  ;;  %v904_v0 = vmul.f32 %v903_v21, %v379_v32  ;;  %v905_v43 = vmul.f32 %v902_v60, %v380_v6  ;;  %v877_v8 = vpop.permute.xlu2 %876 }
 0x2cc   : > { %1147 = vmatpush.bf16.msrb.mxu3 %v1075_v50  ;;  %v920_v35 = vmul.f32 %v919_v38, %v2612_v52  ;;  %v921_v45 = vmul.f32 %v918_v22, %v2613_v47  ;;  %v1102_v50 = vunpack.c.l.b16 %v2291_v5  ;;  %vm2626_vm10 = vcmp.lt.s32.totalorder %v1580_v44, 16 }
 0x2cd   : > { %vm2627_vm6 = vmmov %vm2626_vm10 }
 0x2ce   : > { %v1072_v3 = vpack.c.bf16 %v920_v35, %v912_v11  ;;  %v1073_v23 = vpack.c.bf16 %v921_v45, %v913_v34  ;;  %v1104_v37 = vpack.c.b16 %v1102_v50, %v1102_v50 }
 0x2d0   : > { %1122 = vmatpush.bf16.msra.mxu2 %v1072_v3  ;;  %1148 = vmatpush.bf16.msrb.mxu3 %v1073_v23 }
 0x2d1   : > { %v883_v24 = vpop.permute.xlu0 %882 }
 0x2d2   : > { %v893_v10 = vpop.permute.xlu1 %892 }
 0x2d3   : > { %v894_v13 = vsel %vm360_vm3, %v891_v16, %v893_v10  ;;  %v895_v12 = vsel %vm360_vm3, %v893_v10, %v891_v16  ;;  %vm2614_vm3 = vcmp.lt.s32.totalorder %v1580_v44, 34 }
 0x2d4   : > { %v896_v59 = vmul.f32 %v895_v12, %v363_v4  ;;  %v897_v17 = vmul.f32 %v894_v13, %v364_v20  ;;  %vm2615_vm11 = vmmov %vm2614_vm3 }
 0x2d6   : > { %v1070_v9 = vpack.c.bf16 %v904_v0, %v896_v59  ;;  %v1071_v53 = vpack.c.bf16 %v905_v43, %v897_v17 }
 0x2d8   : > { %1123 = vmatpush.bf16.msra.mxu2 %v1070_v9  ;;  %1149 = vmatpush.bf16.msrb.mxu3 %v1071_v53 }
 0x2da   : > { %v875_v30 = vpop.permute.xlu1 %874 }
 0x2db   : > { %v878_v16 = vsel %vm2614_vm3, %v875_v30, %v877_v8  ;;  %v879_v32 = vsel %vm2615_vm11, %v877_v8, %v875_v30  ;;  %v1246_v30 = vld [vmem:[%s2476_s7] sm:$0xf] }
 0x2dc   : > { %v880_v41 = vmul.f32 %v879_v32, %v331_v1  ;;  %v881_v26 = vmul.f32 %v878_v16, %v332_v28 }
 0x2e2   : > { %v885_v6 = vpop.permute.xlu1 %884 }
 0x2e3   : > { %v886_v4 = vsel %vm2616_vm14, %v883_v24, %v885_v6  ;;  %v887_v20 = vsel %vm2617_vm15, %v885_v6, %v883_v24 }
 0x2e4   : > { %v888_v51 = vmul.f32 %v887_v20, %v347_v49  ;;  %v889_v22 = vmul.f32 %v886_v4, %v348_v31 }
 0x2e6   : > { %v1068_v38 = vpack.c.bf16 %v888_v51, %v880_v41  ;;  %v1069_v63 = vpack.c.bf16 %v889_v22, %v881_v26 }
 0x2e8   : > { %1124 = vmatpush.bf16.msra.mxu2 %v1068_v38  ;;  %1150 = vmatpush.bf16.msrb.mxu3 %v1069_v63 }
 0x2eb   : > { %1125 = vmatmul.bf16.vlgmr.msra.gmra.mxu2 %v1104_v37  ;;  %1151 = vmatmul.bf16.vlgmr.msrb.gmra.mxu3 %v1104_v37 }
 0x316   : > { %v1099_v34 = vpop.permute.xlu2 %1098 }
 0x338   : > { %v1165_v27 = vpop.f32.mrf.mxu0 }
 0x33e   : > { %v1139_v5 = vpop.f32.mrf.mxu3 }
 0x340   : > { %v1167_v1 = vpop.f32.mrf.mxu0 }
 0x346   : > { %v1141_v11 = vpop.f32.mrf.mxu3 }
 0x36e   : > { %v1126_v52 = vpop.f32.mrf.mxu2  ;;  %v1152_v28 = vpop.f32.mrf.mxu3 }
 0x36f   : > { %v1127_v35 = vadd.f32 %v1126_v52, %v1099_v34  ;;  %v1153_v55 = vadd.f32 %v1152_v28, %v1099_v34 }
 0x371   : > { %v1140_v54 = vadd.f32 %v1139_v5, %v1127_v35  ;;  %v1166_v47 = vadd.f32 %v1165_v27, %v1153_v55 }
 0x373   : > { %1219 = vrot.lane.b32.xlu1 %v1140_v54, %s2559_s11  ;;  %1211 = vrot.lane.b32.xlu2 %v1140_v54, %s1433_s22 }
 0x374   : > { %1227 = vrot.lane.b32.xlu0 %v1140_v54, %s1435_s24 }
 0x376   : > { %v1128_v49 = vpop.f32.mrf.mxu2  ;;  %v1154_v31 = vpop.f32.mrf.mxu3 }
 0x37b   : > { %1229 = vrot.lane.b32.xlu1 %v1166_v47, %s1435_s24  ;;  %1185 = vrot.lane.b32.xlu2 %v1140_v54, %s1426_s15 }
 0x37c   : > { %1203 = vrot.lane.b32.xlu0 %v1140_v54, %s1430_s19 }
 0x383   : > { %1193 = vrot.lane.b32.xlu1 %v1140_v54, %s1429_s18  ;;  %1221 = vrot.lane.b32.xlu2 %v1166_v47, %s2559_s11 }
 0x384   : > { %1169 = vrot.lane.b32.xlu0 %v1140_v54, %s1424_s13 }
 0x38b   : > { %1205 = vrot.lane.b32.xlu1 %v1166_v47, %s1430_s19  ;;  %1195 = vrot.lane.b32.xlu2 %v1166_v47, %s1429_s18 }
 0x38c   : > { %1213 = vrot.lane.b32.xlu0 %v1166_v47, %s1433_s22  ;;  %s2628_s22 = sshll.u32 %s2630_s28, 3 }
 0x38d   : > { %s305_s10 = scalar_lea.vmem %s2477_s8, %s2628_s22 }
 0x393   : > { %1171 = vrot.lane.b32.xlu1 %v1166_v47, %s1424_s13  ;;  %1177 = vrot.lane.b32.xlu2 %v1140_v54, %s2560_s17 }
 0x394   : > { %1187 = vrot.lane.b32.xlu0 %v1166_v47, %s1426_s15 }
 0x39b   : > { %1249 = vperm.xlu1 %1411, %v1246_v30  }
 0x39c   : > { %1179 = vrot.lane.b32.xlu0 %v1166_v47, %s2560_s17 }
 0x3cd   : > { %v1212_v45 = vpop.permute.xlu2 %1211 }
 0x3d5   : > { %v1186_v10 = vpop.permute.xlu2 %1185 }
 0x3dd   : > { %v1222_v8 = vpop.permute.xlu2 %1221 }
 0x3e5   : > { %v1220_v61 = vpop.permute.xlu1 %1219  ;;  %v1196_v5 = vpop.permute.xlu2 %1195 }
 0x3e6   : > { %v1228_v3 = vpop.permute.xlu0 %1227 }
 0x3ed   : > { %v1230_v23 = vpop.permute.xlu1 %1229  ;;  %v1178_v49 = vpop.permute.xlu2 %1177 }
 0x3ee   : > { %v1231_v14 = vsel %vm609_vm13, %v1228_v3, %v1230_v23  ;;  %v1232_v60 = vsel %vm609_vm13, %v1230_v23, %v1228_v3  ;;  %v1204_v21 = vpop.permute.xlu0 %1203  ;;  %vm2618_vm13 = vcmp.lt.s32.totalorder %v1580_v44, 112 }
 0x3ef   : > { %v1233_v13 = vmul.f32 %v1231_v14, %v1848_v62  ;;  %v1234_v12 = vmul.f32 %v1232_v60, %v1851_v36  ;;  %v1223_v62 = vsel %vm2618_vm13, %v1220_v61, %v1222_v8  ;;  %vm2619_vm0 = vmmov %vm2618_vm13  ;;  %v1245_v14 = vld [vmem:[%s2475_s6] sm:$0x3] }
 0x3f0   : > { %v1224_v36 = vsel %vm2619_vm0, %v1222_v8, %v1220_v61  ;;  %v1225_v50 = vmul.f32 %v1223_v62, %v1825_v15  ;;  %v1201_v15 = vmul.f32 %v1140_v54, %v1643_v18  ;;  %v1288_v60 = vld.sshfl [vmem:[#allocation1] sm:$0xff pattern:$0x75316420] }
 0x3f1   : > { %v1243_v0 = vpack.c.bf16 %v1233_v13, %v1233_v13  ;;  %v1244_v43 = vpack.c.bf16 %v1234_v12, %v1234_v12  ;;  %v1226_v41 = vmul.f32 %v1224_v36, %v2589_v33  ;;  %v1202_v33 = vmul.f32 %v1166_v47, %v2593_v56 }
 0x3f3   : > { %v1256_v59 = vsel %vm516_vm4, %v1243_v0, 0  ;;  %v1259_v17 = vsel %vm516_vm4, %v1244_v43, 0 }
 0x3f4   : > { %1264 = vmatpush.bf16.msrb.mxu1 %v1256_v59  ;;  %1277 = vmatpush.bf16.msrb.mxu2 %v1259_v17 }
 0x3f5   : > { %v1194_v9 = vpop.permute.xlu1 %1193 }
 0x3f6   : > { %v1170_v53 = vpop.permute.xlu0 %1169  ;;  %v1198_v11 = vsel %vm504_vm7, %v1196_v5, %v1194_v9 }
 0x3fd   : > { %v1206_v16 = vpop.permute.xlu1 %1205 }
 0x3fe   : > { %v1214_v32 = vpop.permute.xlu0 %1213  ;;  %v1207_v24 = vsel %vm529_vm8, %v1204_v21, %v1206_v16  ;;  %v1208_v6 = vsel %vm529_vm8, %v1206_v16, %v1204_v21  ;;  %vm2622_vm8 = vcmp.lt.s32.totalorder %v1580_v44, 15  ;;  %v1289_v21 = vld.sshfl [vmem:[#allocation1 + $0x8] sm:$0xff pattern:$0x75316420] }
 0x3ff   : > { %v1215_v4 = vsel %vm2620_vm1, %v1212_v45, %v1214_v32  ;;  %v1216_v20 = vsel %vm2621_vm2, %v1214_v32, %v1212_v45  ;;  %v1209_v22 = vmul.f32 %v1207_v24, %v1744_v7  ;;  %v1210_v38 = vmul.f32 %v1208_v6, %v2592_v46  ;;  %vm2623_vm5 = vmmov %vm2622_vm8 }
 0x400   : > { %v1217_v26 = vmul.f32 %v1215_v4, %v2590_v48  ;;  %v1218_v51 = vmul.f32 %v1216_v20, %v2591_v2  ;;  %v1197_v48 = vsel %vm504_vm7, %v1194_v9, %v1196_v5  ;;  %v1199_v46 = vmul.f32 %v1198_v11, %v1711_v57 }
 0x401   : > { %v1239_v27 = vpack.c.bf16 %v1209_v22, %v1201_v15  ;;  %v1240_v7 = vpack.c.bf16 %v1210_v38, %v1202_v33  ;;  %v1200_v52 = vmul.f32 %v1197_v48, %v2596_v25  ;;  %vm2624_vm7 = vcmp.lt.s32.totalorder %v1580_v44, 17 }
 0x402   : > { %v1241_v63 = vpack.c.bf16 %v1225_v50, %v1217_v26  ;;  %v1242_v37 = vpack.c.bf16 %v1226_v41, %v1218_v51  ;;  %vm2625_vm9 = vmmov %vm2624_vm7 }
 0x404   : > { %1265 = vmatpush.bf16.msrb.mxu1 %v1241_v63  ;;  %1278 = vmatpush.bf16.msrb.mxu2 %v1242_v37 }
 0x405   : > { %v1172_v28 = vpop.permute.xlu1 %1171 }
 0x406   : > { %v1188_v2 = vpop.permute.xlu0 %1187  ;;  %v1173_v57 = vsel %vm2624_vm7, %v1170_v53, %v1172_v28  ;;  %v1174_v55 = vsel %vm2625_vm9, %v1172_v28, %v1170_v53 }
 0x407   : > { %v1189_v1 = vsel %vm2622_vm8, %v1186_v10, %v1188_v2  ;;  %v1190_v34 = vsel %vm2623_vm5, %v1188_v2, %v1186_v10  ;;  %v1176_v47 = vmul.f32 %v1173_v57, %v1968_v39 }
 0x408   : > { %v1191_v18 = vmul.f32 %v1190_v34, %v1678_v40  ;;  %v1192_v56 = vmul.f32 %v1189_v1, %v2599_v42  ;;  %1266 = vmatpush.bf16.msrb.mxu1 %v1239_v27  ;;  %1279 = vmatpush.bf16.msrb.mxu2 %v1240_v7  ;;  %v1175_v42 = vmul.f32 %v1174_v55, %v1965_v58 }
 0x40a   : > { %v1237_v35 = vpack.c.bf16 %v1199_v46, %v1191_v18  ;;  %v1238_v54 = vpack.c.bf16 %v1200_v52, %v1192_v56 }
 0x40c   : > { %1267 = vmatpush.bf16.msrb.mxu1 %v1237_v35  ;;  %1280 = vmatpush.bf16.msrb.mxu2 %v1238_v54 }
 0x40d   : > { %v1250_v58 = vpop.permute.xlu1 %1249 }
 0x40e   : > { %v1180_v31 = vpop.permute.xlu0 %1179 }
 0x40f   : > { %v1181_v40 = vsel %vm2626_vm10, %v1178_v49, %v1180_v31  ;;  %v1182_v25 = vsel %vm2627_vm6, %v1180_v31, %v1178_v49 }
 0x410   : > { %v1183_v45 = vmul.f32 %v1182_v25, %v2604_v19  ;;  %v1184_v61 = vmul.f32 %v1181_v40, %v2605_v29 }
 0x412   : > { %v1235_v3 = vpack.c.bf16 %v1183_v45, %v1175_v42  ;;  %v1236_v23 = vpack.c.bf16 %v1184_v61, %v1176_v47 }
 0x414   : > { %1268 = vmatpush.bf16.msrb.mxu1 %v1235_v3  ;;  %1281 = vmatpush.bf16.msrb.mxu2 %v1236_v23 }
 0x417   : > { %1370 = vmatmul.msk.bf16.vlgmr.msrb.gmra.mxu1 %vm1107_vm12, %v1245_v14  ;;  %1371 = vmatmul.msk.bf16.vlgmr.msrb.gmra.mxu2 %vm1107_vm12, %v1245_v14 }
 0x494   : > { %v1270_v44 = vpop.f32.mrf.mxu1 }
 0x495   : > { %v1271_v39 = vadd.f32 %v1270_v44, %v1250_v58 }
 0x497   : > { %v1292_v13 = vadd.f32 %v1288_v60, %v1271_v39 }
 0x499   : > { %v1294_v43 = vmax.f32 %v1292_v13, 0.0 }
 0x49a   : > { %v1283_v19 = vpop.f32.mrf.mxu2 }
 0x49b   : > { %v1284_v29 = vadd.f32 %v1283_v19, %v1250_v58 }
 0x49c   : > { %v1272_v10 = vpop.f32.mrf.mxu1 }
 0x49d   : > { %v1293_v12 = vadd.f32 %v1289_v21, %v1284_v29 }
 0x49f   : > { %v1295_v0 = vmax.f32 %v1293_v12, 0.0 }
 0x4a1   : > { %v1298_v59 = vrot.slane %v1295_v0, 4 }
 0x4a2   : > { %v1285_v17 = vpop.f32.mrf.mxu2 }
 0x4a3   : > { %v1299_v9 = vsel %vm516_vm4, %v1294_v43, %v1298_v59 }
 0x4a4   : > { %1301 = vst [vmem:[%s305_s10] sm:$0xff] %v1299_v9 }
 0x4a5 PF: > { %s18_s27 = sadd.s32 1, %s1420_s27  }
 0x4a6   : > { %p15_p4 = scmp.ge.s32.totalorder %s18_s27, 4  }
 0x4a8   :  { %17 = sbr.rel (!%p15_p4) target bundleno = 1 (0x1), region = 82 }

</bundles_post_ra>
